<compile_context>
chip_gen: v5e
topology: v5e:2x2
jax: 0.10.0
libtpu: 0.0.40
codegen_flags: <defaults>
</compile_context>

<pallas_src>
import math
from dataclasses import dataclass
from typing import Optional

import jax
import jax.numpy as jnp
from jax.experimental import pallas as pl
from jax.experimental.pallas import tpu as pltpu


@dataclass
class NezhaConfig:
    vocab_size: int = 128
    type_vocab_size: int = 2
    hidden_size: int = 32
    num_hidden_layers: int = 2
    num_attention_heads: int = 4
    intermediate_size: int = 64
    max_relative_position: int = 8
    layer_norm_eps: float = 1e-12
    hidden_dropout_prob: float = 0.1
    classifier_dropout: Optional[float] = None
    num_labels: int = 51
    loss_function: str = "CE"


@dataclass
class ClassificationOutput:
    loss: Optional[jnp.ndarray] = None
    logits: Optional[jnp.ndarray] = None


def relative_positions_encoding(length, depth, max_relative_position):
    """NezhaRelativePositionsEncoding: sinusoidal (length, length, depth) tensor."""
    vocab = 2 * max_relative_position + 1
    rng = jnp.arange(length)
    distance = rng[None, :] - rng[:, None]                      # [i, j] = j - i
    final = jnp.clip(distance, -max_relative_position, max_relative_position) + max_relative_position
    pos = jnp.arange(vocab, dtype=jnp.float32)[:, None]
    div = jnp.exp(jnp.arange(0, depth, 2, dtype=jnp.float32) * (-math.log(10000.0) / depth))
    table = jnp.zeros((vocab, depth), jnp.float32)
    table = table.at[:, 0::2].set(jnp.sin(pos * div))
    table = table.at[:, 1::2].set(jnp.cos(pos * div))
    return table[final]                                         # (length, length, depth)


def make_nezha_kernel(cfg: NezhaConfig, seq: int, c_pad: int):
    H = cfg.hidden_size
    NH = cfg.num_attention_heads
    assert H % NH == 0
    DH = H // NH
    L = cfg.num_hidden_layers
    S = seq
    EPS = cfg.layer_norm_eps
    INV_SQRT_DH = 1.0 / math.sqrt(DH)
    NEG = float(jnp.finfo(jnp.float32).min)  # noqa: F841  (mask is precomputed in wrapper)

    def layernorm(x, g, b):
        mu = jnp.mean(x, axis=-1, keepdims=True)
        var = jnp.mean(jnp.square(x - mu), axis=-1, keepdims=True)
        return (x - mu) * jax.lax.rsqrt(var + EPS) * g + b

    def gelu(x):
        # tanh-approximate GELU: the transcendental lands in the EUP slot instead of a
        # long VALU erf polynomial (perf-review item; ~1e-3 max abs dev vs exact erf GELU).
        c = 0.7978845608028654  # sqrt(2/pi)
        return 0.5 * x * (1.0 + jnp.tanh(c * (x + 0.044715 * x * x * x)))

    def kernel(x_ref, mask_ref, rel_ref, emb_g_ref, emb_b_ref,
               wq_ref, bq_ref, wk_ref, bk_ref, wv_ref, bv_ref,
               wao_ref, bao_ref, ln1_g_ref, ln1_b_ref,
               wi_ref, bi_ref, wo_ref, bo_ref, ln2_g_ref, ln2_b_ref,
               wp_ref, bp_ref, wc_ref, bc_ref,
               logits_ref, h_ref, ctx_ref):
        f32 = jnp.float32
        bf16 = jnp.bfloat16
        l = pl.program_id(1)

        @pl.when(l == 0)
        def _init():
            # NezhaEmbeddings LayerNorm (embedding dropout = identity in eval mode)
            h_ref[...] = layernorm(x_ref[...], emb_g_ref[...], emb_b_ref[...])

        h2 = h_ref[...]                        # (S, H) f32 carried hidden state
        hb = h2.astype(bf16)
        mask_add = mask_ref[...]               # (1, S) additive key mask (precomputed)
        rel = rel_ref[...]                     # (S, S, DH) bf16

        # fused Q/K/V projections (K = H), bf16 on the MXU, f32 accumulation
        q = jnp.dot(hb, wq_ref[...], preferred_element_type=f32) + bq_ref[...]
        k = jnp.dot(hb, wk_ref[...], preferred_element_type=f32) + bk_ref[...]
        v = jnp.dot(hb, wv_ref[...], preferred_element_type=f32) + bv_ref[...]

        for hd in range(NH):                   # static unroll over heads (shared rel table)
            s0, s1 = hd * DH, (hd + 1) * DH
            qh = q[:, s0:s1].astype(bf16)      # (S, DH)
            kh = k[:, s0:s1].astype(bf16)
            vh = v[:, s0:s1].astype(bf16)
            # content scores and Nezha relative-position key scores, both on the MXU
            qk = jnp.einsum('id,jd->ij', qh, kh, preferred_element_type=f32)
            kp = jnp.einsum('imd,ijd->imj', qh.reshape(S, 1, DH), rel,
                            preferred_element_type=f32).reshape(S, S)
            scores = (qk + kp) * INV_SQRT_DH + mask_add
            m = jnp.max(scores, axis=-1, keepdims=True)
            e = jnp.exp(scores - m)
            denom = jnp.sum(e, axis=-1, keepdims=True)
            p = e * pl.reciprocal(denom, approx=True)   # attention dropout = identity (eval)
            pb = p.astype(bf16)
            ctx = jnp.einsum('ij,jd->id', pb, vh, preferred_element_type=f32)
            # Nezha relative-position value scores (MXU batched einsum, batch = query pos)
            vp = jnp.einsum('imj,ijd->imd', pb.reshape(S, 1, S), rel,
                            preferred_element_type=f32).reshape(S, DH)
            ctx_ref[:, s0:s1] = ctx + vp       # assemble heads into a lane-dense slab

        # single fused attention output projection over all heads (K = H)
        attn = jnp.dot(ctx_ref[...].astype(bf16), wao_ref[...],
                       preferred_element_type=f32) + bao_ref[...]
        h_attn = layernorm(attn + h2, ln1_g_ref[...], ln1_b_ref[...])        # NezhaSelfOutput
        inter = gelu(jnp.dot(h_attn.astype(bf16), wi_ref[...],
                             preferred_element_type=f32) + bi_ref[...])      # intermediate
        out2 = jnp.dot(inter.astype(bf16), wo_ref[...],
                       preferred_element_type=f32) + bo_ref[...]             # output dense
        h_new = layernorm(out2 + h_attn, ln2_g_ref[...], ln2_b_ref[...])     # NezhaOutput
        h_ref[...] = h_new

        @pl.when(l == L - 1)
        def _final():
            # pooler: tanh(dense(first-token hidden)); classifier dropout = identity (eval)
            cls = h_new[0:1, :]                                              # (1, H)
            pooled = jnp.tanh(jnp.dot(cls, wp_ref[...], preferred_element_type=f32)
                              + bp_ref[...])
            logits = jnp.dot(pooled, wc_ref[...], preferred_element_type=f32) + bc_ref[...]
            logits_ref[...] = logits.reshape(1, 1, c_pad)

    return kernel


def init_params(cfg: NezhaConfig, key):
    H, I, L, C = cfg.hidden_size, cfg.intermediate_size, cfg.num_hidden_layers, cfg.num_labels
    ks = jax.random.split(key, 10)
    n = lambda k, shape: 0.02 * jax.random.normal(k, shape, dtype=jnp.float32)
    return dict(
        word_emb=n(ks[0], (cfg.vocab_size, H)),
        type_emb=n(ks[1], (cfg.type_vocab_size, H)),
        emb_ln_g=jnp.ones((1, H), jnp.float32), emb_ln_b=jnp.zeros((1, H), jnp.float32),
        wq=n(ks[2], (L, H, H)), bq=jnp.zeros((L, 1, H), jnp.float32),
        wk=n(ks[3], (L, H, H)), bk=jnp.zeros((L, 1, H), jnp.float32),
        wv=n(ks[4], (L, H, H)), bv=jnp.zeros((L, 1, H), jnp.float32),
        wao=n(ks[5], (L, H, H)), bao=jnp.zeros((L, 1, H), jnp.float32),
        ln1_g=jnp.ones((L, 1, H), jnp.float32), ln1_b=jnp.zeros((L, 1, H), jnp.float32),
        wi=n(ks[6], (L, H, I)), bi=jnp.zeros((L, 1, I), jnp.float32),
        wo=n(ks[7], (L, I, H)), bo=jnp.zeros((L, 1, H), jnp.float32),
        ln2_g=jnp.ones((L, 1, H), jnp.float32), ln2_b=jnp.zeros((L, 1, H), jnp.float32),
        wp=n(ks[8], (H, H)), bp=jnp.zeros((1, H), jnp.float32),
        wc=n(ks[9], (H, C)), bc=jnp.zeros((1, C), jnp.float32),
    )


def nezha_base_network_forward(params, cfg: NezhaConfig, input_ids,
                               attention_mask=None, label=None):
    B, S = input_ids.shape
    H, I, L, C = cfg.hidden_size, cfg.intermediate_size, cfg.num_hidden_layers, cfg.num_labels
    DH = H // cfg.num_attention_heads
    if attention_mask is None:
        attention_mask = jnp.ones((B, S), jnp.float32)
    token_type_ids = jnp.zeros_like(input_ids)

    # plain-JAX glue: embedding gather (word + token_type); Nezha has no absolute position
    # embeddings.  Extended attention mask is precomputed (hoisted) here: (1-mask)*finfo.min.
    x_emb = (params['word_emb'][input_ids] + params['type_emb'][token_type_ids]).astype(jnp.float32)
    ext_mask = ((1.0 - attention_mask.astype(jnp.float32))
                * float(jnp.finfo(jnp.float32).min)).reshape(B, 1, S)
    rel = relative_positions_encoding(S, DH, cfg.max_relative_position).astype(jnp.bfloat16)

    # lane-dense classifier: pad num_labels -> multiple of 128; sliced back after the call
    C_PAD = 128 * ((C + 127) // 128)
    wc_pad = jnp.zeros((H, C_PAD), jnp.float32).at[:, :C].set(params['wc'])
    bc_pad = jnp.zeros((1, C_PAD), jnp.float32).at[:, :C].set(params['bc'])

    bf = lambda w: w.astype(jnp.bfloat16)   # bf16 weights for the MXU, f32 accumulation
    operands = [
        x_emb, ext_mask, rel,
        params['emb_ln_g'], params['emb_ln_b'],
        bf(params['wq']), params['bq'], bf(params['wk']), params['bk'],
        bf(params['wv']), params['bv'], bf(params['wao']), params['bao'],
        params['ln1_g'], params['ln1_b'],
        bf(params['wi']), params['bi'], bf(params['wo']), params['bo'],
        params['ln2_g'], params['ln2_b'],
        params['wp'], params['bp'], wc_pad, bc_pad,
    ]

    def per_batch(tail):
        n = len(tail)
        return pl.BlockSpec((None,) + tail, lambda b, l: (b,) + (0,) * n)

    def per_layer(tail):
        n = len(tail)
        return pl.BlockSpec((None,) + tail, lambda b, l: (l,) + (0,) * n)

    def shared(shape):
        n = len(shape)
        return pl.BlockSpec(shape, lambda b, l: (0,) * n)

    in_specs = [
        per_batch((S, H)),                            # x_emb          (B, S, H)
        per_batch((1, S)),                            # extended mask  (B, 1, S)
        shared((S, S, DH)),                           # rel            (S, S, DH) bf16
        shared((1, H)), shared((1, H)),               # emb LayerNorm g / b
        per_layer((H, H)), per_layer((1, H)),         # wq, bq
        per_layer((H, H)), per_layer((1, H)),         # wk, bk
        per_layer((H, H)), per_layer((1, H)),         # wv, bv
        per_layer((H, H)), per_layer((1, H)),         # wao, bao
        per_layer((1, H)), per_layer((1, H)),         # ln1 g, b
        per_layer((H, I)), per_layer((1, I)),         # wi, bi
        per_layer((I, H)), per_layer((1, H)),         # wo, bo
        per_layer((1, H)), per_layer((1, H)),         # ln2 g, b
        shared((H, H)), shared((1, H)),               # pooler wp, bp
        shared((H, C_PAD)), shared((1, C_PAD)),       # classifier wc_pad, bc_pad
    ]

    kernel = make_nezha_kernel(cfg, S, C_PAD)
    logits3 = pl.pallas_call(
        kernel,
        out_shape=jax.ShapeDtypeStruct((B, 1, C_PAD), jnp.float32),
        grid_spec=pltpu.PrefetchScalarGridSpec(
            num_scalar_prefetch=0,
            grid=(B, L),                              # batch (parallel), layer (carried)
            in_specs=in_specs,
            out_specs=pl.BlockSpec((1, 1, C_PAD), lambda b, l: (b, 0, 0)),
            scratch_shapes=[pltpu.VMEM((S, H), jnp.float32),   # hidden-state carry
                            pltpu.VMEM((S, H), jnp.float32)]), # assembled attention context
        compiler_params=pltpu.CompilerParams(
            dimension_semantics=("parallel", "arbitrary"),     # batch axis -> megacore on v7x
            vmem_limit_bytes=32 * 1024 * 1024),
    )(*operands)

    logits = logits3[:, 0, :C]
    _preds = jnp.argmax(logits, axis=-1)   # computed (and unused) exactly like the torch forward
    loss = None
    if label is not None:
        lab = label.reshape(-1).astype(jnp.int32)
        logp = jax.nn.log_softmax(logits, axis=-1)
        loss = -jnp.mean(jnp.take_along_axis(logp, lab[:, None], axis=-1))  # nn.CrossEntropyLoss (mean)
    return ClassificationOutput(loss=loss, logits=logits)


if __name__ == "__main__":
    cfg = NezhaConfig()
    key = jax.random.PRNGKey(0)
    kp, ki, kl = jax.random.split(key, 3)
    params = init_params(cfg, kp)

    B, S = 2, 8
    input_ids = jax.random.randint(ki, (B, S), 0, cfg.vocab_size)
    attention_mask = jnp.ones((B, S), jnp.float32).at[1, 6:].set(0.0)   # pad tail of sample 1
    label = jax.random.randint(kl, (B,), 0, cfg.num_labels)

    out = nezha_base_network_forward(params, cfg, input_ids,
                                     attention_mask=attention_mask, label=label)
    jax.block_until_ready(out.logits)
    jax.block_until_ready(out.loss)
    assert out.logits.shape == (B, cfg.num_labels)
    assert bool(jnp.all(jnp.isfinite(out.logits))) and bool(jnp.isfinite(out.loss))
    print("KERNEL_OK")
</pallas_src>

<mosaic_0001>
module attributes {stable_mosaic.version = 11 : i64} {
  func.func @kernel(%arg0: i32, %arg1: i32, %arg2: memref<1x8x32xf32, #tpu.memory_space<vmem>>, %arg3: memref<1x1x8xf32, #tpu.memory_space<vmem>>, %arg4: memref<8x8x8xbf16, #tpu.memory_space<vmem>>, %arg5: memref<1x32xf32, #tpu.memory_space<vmem>>, %arg6: memref<1x32xf32, #tpu.memory_space<vmem>>, %arg7: memref<1x32x32xbf16, #tpu.memory_space<vmem>>, %arg8: memref<1x1x32xf32, #tpu.memory_space<vmem>>, %arg9: memref<1x32x32xbf16, #tpu.memory_space<vmem>>, %arg10: memref<1x1x32xf32, #tpu.memory_space<vmem>>, %arg11: memref<1x32x32xbf16, #tpu.memory_space<vmem>>, %arg12: memref<1x1x32xf32, #tpu.memory_space<vmem>>, %arg13: memref<1x32x32xbf16, #tpu.memory_space<vmem>>, %arg14: memref<1x1x32xf32, #tpu.memory_space<vmem>>, %arg15: memref<1x1x32xf32, #tpu.memory_space<vmem>>, %arg16: memref<1x1x32xf32, #tpu.memory_space<vmem>>, %arg17: memref<1x32x64xbf16, #tpu.memory_space<vmem>>, %arg18: memref<1x1x64xf32, #tpu.memory_space<vmem>>, %arg19: memref<1x64x32xbf16, #tpu.memory_space<vmem>>, %arg20: memref<1x1x32xf32, #tpu.memory_space<vmem>>, %arg21: memref<1x1x32xf32, #tpu.memory_space<vmem>>, %arg22: memref<1x1x32xf32, #tpu.memory_space<vmem>>, %arg23: memref<32x32xf32, #tpu.memory_space<vmem>>, %arg24: memref<1x32xf32, #tpu.memory_space<vmem>>, %arg25: memref<32x128xf32, #tpu.memory_space<vmem>>, %arg26: memref<1x128xf32, #tpu.memory_space<vmem>>, %arg27: memref<1x1x128xf32, #tpu.memory_space<vmem>>, %arg28: memref<8x32xf32, #tpu.memory_space<vmem>>, %arg29: memref<8x32xf32, #tpu.memory_space<vmem>>) attributes {dimension_semantics = [#tpu.dimension_semantics<parallel>, #tpu.dimension_semantics<arbitrary>], iteration_bounds = array<i64: 2, 2>, scalar_prefetch = 0 : i64, scratch_operands = 2 : i64, tpu.core_type = #tpu.core_type<tc>, window_params = [{transform_indices = @transform_0, window_bounds = array<i64: 1, 8, 32>}, {transform_indices = @transform_1, window_bounds = array<i64: 1, 1, 8>}, {pipeline_mode = #tpu.pipeline_mode<synchronous>, transform_indices = @transform_2, window_bounds = array<i64: 8, 8, 8>}, {pipeline_mode = #tpu.pipeline_mode<synchronous>, transform_indices = @transform_3, window_bounds = array<i64: 1, 32>}, {pipeline_mode = #tpu.pipeline_mode<synchronous>, transform_indices = @transform_4, window_bounds = array<i64: 1, 32>}, {transform_indices = @transform_5, window_bounds = array<i64: 1, 32, 32>}, {transform_indices = @transform_6, window_bounds = array<i64: 1, 1, 32>}, {transform_indices = @transform_7, window_bounds = array<i64: 1, 32, 32>}, {transform_indices = @transform_8, window_bounds = array<i64: 1, 1, 32>}, {transform_indices = @transform_9, window_bounds = array<i64: 1, 32, 32>}, {transform_indices = @transform_10, window_bounds = array<i64: 1, 1, 32>}, {transform_indices = @transform_11, window_bounds = array<i64: 1, 32, 32>}, {transform_indices = @transform_12, window_bounds = array<i64: 1, 1, 32>}, {transform_indices = @transform_13, window_bounds = array<i64: 1, 1, 32>}, {transform_indices = @transform_14, window_bounds = array<i64: 1, 1, 32>}, {transform_indices = @transform_15, window_bounds = array<i64: 1, 32, 64>}, {transform_indices = @transform_16, window_bounds = array<i64: 1, 1, 64>}, {transform_indices = @transform_17, window_bounds = array<i64: 1, 64, 32>}, {transform_indices = @transform_18, window_bounds = array<i64: 1, 1, 32>}, {transform_indices = @transform_19, window_bounds = array<i64: 1, 1, 32>}, {transform_indices = @transform_20, window_bounds = array<i64: 1, 1, 32>}, {pipeline_mode = #tpu.pipeline_mode<synchronous>, transform_indices = @transform_21, window_bounds = array<i64: 32, 32>}, {pipeline_mode = #tpu.pipeline_mode<synchronous>, transform_indices = @transform_22, window_bounds = array<i64: 1, 32>}, {pipeline_mode = #tpu.pipeline_mode<synchronous>, transform_indices = @transform_23, window_bounds = array<i64: 32, 128>}, {pipeline_mode = #tpu.pipeline_mode<synchronous>, transform_indices = @transform_24, window_bounds = array<i64: 1, 128>}, {transform_indices = @transform_25, window_bounds = array<i64: 1, 1, 128>}]} {
    %c0_i32 = arith.constant 0 : i32
    %0 = arith.cmpi eq, %arg1, %c0_i32 : i32
    %1 = arith.extui %0 : i1 to i32
    %c0_i32_0 = arith.constant 0 : i32
    %2 = arith.cmpi ne, %1, %c0_i32_0 : i32
    scf.if %2 {
      %c0_113 = arith.constant 0 : index
      %c0_114 = arith.constant 0 : index
      %c0_115 = arith.constant 0 : index
      %253 = vector.load %arg2[%c0_113, %c0_114, %c0_115] : memref<1x8x32xf32, #tpu.memory_space<vmem>>, vector<1x8x32xf32>
      %254 = vector.shape_cast %253 : vector<1x8x32xf32> to vector<8x32xf32>
      %c0_116 = arith.constant 0 : index
      %c0_117 = arith.constant 0 : index
      %255 = vector.load %arg5[%c0_116, %c0_117] : memref<1x32xf32, #tpu.memory_space<vmem>>, vector<1x32xf32>
      %c0_118 = arith.constant 0 : index
      %c0_119 = arith.constant 0 : index
      %256 = vector.load %arg6[%c0_118, %c0_119] : memref<1x32xf32, #tpu.memory_space<vmem>>, vector<1x32xf32>
      %cst_120 = arith.constant dense<0.000000e+00> : vector<8xf32>
      %257 = vector.multi_reduction <add>, %254, %cst_120 [1] : vector<8x32xf32> to vector<8xf32>
      %258 = vector.shape_cast %257 : vector<8xf32> to vector<8x1xf32>
      %cst_121 = arith.constant 3.200000e+01 : f32
      %259 = vector.broadcast %cst_121 : f32 to vector<8x1xf32>
      %260 = arith.divf %258, %259 : vector<8x1xf32>
      %261 = vector.broadcast %260 : vector<8x1xf32> to vector<8x32xf32>
      %262 = arith.subf %254, %261 : vector<8x32xf32>
      %263 = arith.mulf %262, %262 : vector<8x32xf32>
      %cst_122 = arith.constant dense<0.000000e+00> : vector<8xf32>
      %264 = vector.multi_reduction <add>, %263, %cst_122 [1] : vector<8x32xf32> to vector<8xf32>
      %265 = vector.shape_cast %264 : vector<8xf32> to vector<8x1xf32>
      %cst_123 = arith.constant 3.200000e+01 : f32
      %266 = vector.broadcast %cst_123 : f32 to vector<8x1xf32>
      %267 = arith.divf %265, %266 : vector<8x1xf32>
      %268 = vector.broadcast %260 : vector<8x1xf32> to vector<8x32xf32>
      %269 = arith.subf %254, %268 : vector<8x32xf32>
      %cst_124 = arith.constant 9.99999996E-13 : f32
      %270 = vector.broadcast %cst_124 : f32 to vector<8x1xf32>
      %271 = arith.addf %267, %270 : vector<8x1xf32>
      %272 = math.rsqrt %271 : vector<8x1xf32>
      %273 = vector.broadcast %272 : vector<8x1xf32> to vector<8x32xf32>
      %274 = arith.mulf %269, %273 : vector<8x32xf32>
      %275 = vector.broadcast %255 : vector<1x32xf32> to vector<8x32xf32>
      %276 = arith.mulf %274, %275 : vector<8x32xf32>
      %277 = vector.broadcast %256 : vector<1x32xf32> to vector<8x32xf32>
      %278 = arith.addf %276, %277 : vector<8x32xf32>
      %c0_125 = arith.constant 0 : index
      %c0_126 = arith.constant 0 : index
      %279 = vector.load %arg28[%c0_125, %c0_126] : memref<8x32xf32, #tpu.memory_space<vmem>>, vector<8x32xf32>
      tpu.vector_store %arg28[%c0_125, %c0_126], %278 {strides = array<i32>} : memref<8x32xf32, #tpu.memory_space<vmem>>, vector<8x32xf32>,
    } else {
    }
    %c0 = arith.constant 0 : index
    %c0_1 = arith.constant 0 : index
    %3 = vector.load %arg28[%c0, %c0_1] : memref<8x32xf32, #tpu.memory_space<vmem>>, vector<8x32xf32>
    %4 = arith.truncf %3 : vector<8x32xf32> to vector<8x32xbf16>
    %c0_2 = arith.constant 0 : index
    %c0_3 = arith.constant 0 : index
    %c0_4 = arith.constant 0 : index
    %5 = vector.load %arg3[%c0_2, %c0_3, %c0_4] : memref<1x1x8xf32, #tpu.memory_space<vmem>>, vector<1x1x8xf32>
    %6 = vector.shape_cast %5 : vector<1x1x8xf32> to vector<1x8xf32>
    %c0_5 = arith.constant 0 : index
    %c0_6 = arith.constant 0 : index
    %c0_7 = arith.constant 0 : index
    %7 = vector.load %arg4[%c0_5, %c0_6, %c0_7] : memref<8x8x8xbf16, #tpu.memory_space<vmem>>, vector<8x8x8xbf16>
    %c0_8 = arith.constant 0 : index
    %c0_9 = arith.constant 0 : index
    %c0_10 = arith.constant 0 : index
    %8 = vector.load %arg7[%c0_8, %c0_9, %c0_10] : memref<1x32x32xbf16, #tpu.memory_space<vmem>>, vector<1x32x32xbf16>
    %9 = vector.shape_cast %8 : vector<1x32x32xbf16> to vector<32x32xbf16>
    %cst = arith.constant dense<0.000000e+00> : vector<8x32xf32>
    %10 = tpu.matmul %4, %9, %cst {dimension_numbers = #tpu.dot_dimension_numbers<[1], [0], [0], [1], [0, 0, 1, 1], [], []>} : vector<8x32xbf16>, vector<32x32xbf16>, vector<8x32xf32> -> vector<8x32xf32>
    %c0_11 = arith.constant 0 : index
    %c0_12 = arith.constant 0 : index
    %c0_13 = arith.constant 0 : index
    %11 = vector.load %arg8[%c0_11, %c0_12, %c0_13] : memref<1x1x32xf32, #tpu.memory_space<vmem>>, vector<1x1x32xf32>
    %12 = vector.shape_cast %11 : vector<1x1x32xf32> to vector<1x32xf32>
    %13 = vector.broadcast %12 : vector<1x32xf32> to vector<8x32xf32>
    %14 = arith.addf %10, %13 : vector<8x32xf32>
    %c0_14 = arith.constant 0 : index
    %c0_15 = arith.constant 0 : index
    %c0_16 = arith.constant 0 : index
    %15 = vector.load %arg9[%c0_14, %c0_15, %c0_16] : memref<1x32x32xbf16, #tpu.memory_space<vmem>>, vector<1x32x32xbf16>
    %16 = vector.shape_cast %15 : vector<1x32x32xbf16> to vector<32x32xbf16>
    %cst_17 = arith.constant dense<0.000000e+00> : vector<8x32xf32>
    %17 = tpu.matmul %4, %16, %cst_17 {dimension_numbers = #tpu.dot_dimension_numbers<[1], [0], [0], [1], [0, 0, 1, 1], [], []>} : vector<8x32xbf16>, vector<32x32xbf16>, vector<8x32xf32> -> vector<8x32xf32>
    %c0_18 = arith.constant 0 : index
    %c0_19 = arith.constant 0 : index
    %c0_20 = arith.constant 0 : index
    %18 = vector.load %arg10[%c0_18, %c0_19, %c0_20] : memref<1x1x32xf32, #tpu.memory_space<vmem>>, vector<1x1x32xf32>
    %19 = vector.shape_cast %18 : vector<1x1x32xf32> to vector<1x32xf32>
    %20 = vector.broadcast %19 : vector<1x32xf32> to vector<8x32xf32>
    %21 = arith.addf %17, %20 : vector<8x32xf32>
    %c0_21 = arith.constant 0 : index
    %c0_22 = arith.constant 0 : index
    %c0_23 = arith.constant 0 : index
    %22 = vector.load %arg11[%c0_21, %c0_22, %c0_23] : memref<1x32x32xbf16, #tpu.memory_space<vmem>>, vector<1x32x32xbf16>
    %23 = vector.shape_cast %22 : vector<1x32x32xbf16> to vector<32x32xbf16>
    %cst_24 = arith.constant dense<0.000000e+00> : vector<8x32xf32>
    %24 = tpu.matmul %4, %23, %cst_24 {dimension_numbers = #tpu.dot_dimension_numbers<[1], [0], [0], [1], [0, 0, 1, 1], [], []>} : vector<8x32xbf16>, vector<32x32xbf16>, vector<8x32xf32> -> vector<8x32xf32>
    %c0_25 = arith.constant 0 : index
    %c0_26 = arith.constant 0 : index
    %c0_27 = arith.constant 0 : index
    %25 = vector.load %arg12[%c0_25, %c0_26, %c0_27] : memref<1x1x32xf32, #tpu.memory_space<vmem>>, vector<1x1x32xf32>
    %26 = vector.shape_cast %25 : vector<1x1x32xf32> to vector<1x32xf32>
    %27 = vector.broadcast %26 : vector<1x32xf32> to vector<8x32xf32>
    %28 = arith.addf %24, %27 : vector<8x32xf32>
    %29 = vector.extract_strided_slice %14 {offsets = [0, 0], sizes = [8, 8], strides = [1, 1]} : vector<8x32xf32> to vector<8x8xf32>
    %30 = arith.truncf %29 : vector<8x8xf32> to vector<8x8xbf16>
    %31 = vector.extract_strided_slice %21 {offsets = [0, 0], sizes = [8, 8], strides = [1, 1]} : vector<8x32xf32> to vector<8x8xf32>
    %32 = arith.truncf %31 : vector<8x8xf32> to vector<8x8xbf16>
    %33 = vector.extract_strided_slice %28 {offsets = [0, 0], sizes = [8, 8], strides = [1, 1]} : vector<8x32xf32> to vector<8x8xf32>
    %34 = arith.truncf %33 : vector<8x8xf32> to vector<8x8xbf16>
    "tpu.trace_start"() <{level = 10 : i32, message = "id,jd->ij"}> : () -> ()
    %cst_28 = arith.constant dense<0.000000e+00> : vector<8x8xf32>
    %35 = tpu.matmul %30, %32, %cst_28 {dimension_numbers = #tpu.dot_dimension_numbers<[1], [1], [0], [0], [0, 0, 1, 0], [], []>} : vector<8x8xbf16>, vector<8x8xbf16>, vector<8x8xf32> -> vector<8x8xf32>
    "tpu.trace_stop"() : () -> ()
    %36 = vector.shape_cast %30 : vector<8x8xbf16> to vector<8x1x8xbf16>
    "tpu.trace_start"() <{level = 10 : i32, message = "imd,ijd->imj"}> : () -> ()
    %cst_29 = arith.constant dense<0.000000e+00> : vector<8x1x8xf32>
    %37 = tpu.matmul %36, %7, %cst_29 {dimension_numbers = #tpu.dot_dimension_numbers<[2], [2], [1], [1], [0, 0, 0, 1, 1, 1], [0], [0]>} : vector<8x1x8xbf16>, vector<8x8x8xbf16>, vector<8x1x8xf32> -> vector<8x1x8xf32>
    "tpu.trace_stop"() : () -> ()
    %38 = vector.shape_cast %37 : vector<8x1x8xf32> to vector<8x8xf32>
    %39 = arith.addf %35, %38 : vector<8x8xf32>
    %cst_30 = arith.constant 0.353553385 : f32
    %40 = vector.broadcast %cst_30 : f32 to vector<8x8xf32>
    %41 = arith.mulf %39, %40 : vector<8x8xf32>
    %42 = vector.broadcast %6 : vector<1x8xf32> to vector<8x8xf32>
    %43 = arith.addf %41, %42 : vector<8x8xf32>
    %cst_31 = arith.constant dense<0xFF800000> : vector<8xf32>
    %44 = vector.multi_reduction <maximumf>, %43, %cst_31 [1] : vector<8x8xf32> to vector<8xf32>
    %45 = vector.shape_cast %44 : vector<8xf32> to vector<8x1xf32>
    %46 = vector.broadcast %45 : vector<8x1xf32> to vector<8x8xf32>
    %47 = arith.subf %43, %46 : vector<8x8xf32>
    %48 = math.exp %47 : vector<8x8xf32>
    %cst_32 = arith.constant dense<0.000000e+00> : vector<8xf32>
    %49 = vector.multi_reduction <add>, %48, %cst_32 [1] : vector<8x8xf32> to vector<8xf32>
    %50 = vector.shape_cast %49 : vector<8xf32> to vector<8x1xf32>
    %51 = tpu.reciprocal %50 {approx = true} : vector<8x1xf32> -> vector<8x1xf32>
    %52 = vector.broadcast %51 : vector<8x1xf32> to vector<8x8xf32>
    %53 = arith.mulf %48, %52 : vector<8x8xf32>
    %54 = arith.truncf %53 : vector<8x8xf32> to vector<8x8xbf16>
    "tpu.trace_start"() <{level = 10 : i32, message = "ij,jd->id"}> : () -> ()
    %cst_33 = arith.constant dense<0.000000e+00> : vector<8x8xf32>
    %55 = tpu.matmul %54, %34, %cst_33 {dimension_numbers = #tpu.dot_dimension_numbers<[1], [0], [0], [1], [0, 0, 1, 1], [], []>} : vector<8x8xbf16>, vector<8x8xbf16>, vector<8x8xf32> -> vector<8x8xf32>
    "tpu.trace_stop"() : () -> ()
    %56 = vector.shape_cast %54 : vector<8x8xbf16> to vector<8x1x8xbf16>
    "tpu.trace_start"() <{level = 10 : i32, message = "imj,ijd->imd"}> : () -> ()
    %cst_34 = arith.constant dense<0.000000e+00> : vector<8x1x8xf32>
    %57 = tpu.matmul %56, %7, %cst_34 {dimension_numbers = #tpu.dot_dimension_numbers<[2], [1], [1], [2], [0, 0, 0, 1, 1, 2], [0], [0]>} : vector<8x1x8xbf16>, vector<8x8x8xbf16>, vector<8x1x8xf32> -> vector<8x1x8xf32>
    "tpu.trace_stop"() : () -> ()
    %58 = vector.shape_cast %57 : vector<8x1x8xf32> to vector<8x8xf32>
    %59 = arith.addf %55, %58 : vector<8x8xf32>
    %c0_35 = arith.constant 0 : index
    %c0_36 = arith.constant 0 : index
    %60 = vector.load %arg29[%c0_35, %c0_36] : memref<8x32xf32, #tpu.memory_space<vmem>>, vector<8x8xf32>
    tpu.vector_store %arg29[%c0_35, %c0_36], %59 {strides = array<i32>} : memref<8x32xf32, #tpu.memory_space<vmem>>, vector<8x8xf32>,
    %61 = vector.extract_strided_slice %14 {offsets = [0, 8], sizes = [8, 8], strides = [1, 1]} : vector<8x32xf32> to vector<8x8xf32>
    %62 = arith.truncf %61 : vector<8x8xf32> to vector<8x8xbf16>
    %63 = vector.extract_strided_slice %21 {offsets = [0, 8], sizes = [8, 8], strides = [1, 1]} : vector<8x32xf32> to vector<8x8xf32>
    %64 = arith.truncf %63 : vector<8x8xf32> to vector<8x8xbf16>
    %65 = vector.extract_strided_slice %28 {offsets = [0, 8], sizes = [8, 8], strides = [1, 1]} : vector<8x32xf32> to vector<8x8xf32>
    %66 = arith.truncf %65 : vector<8x8xf32> to vector<8x8xbf16>
    "tpu.trace_start"() <{level = 10 : i32, message = "id,jd->ij"}> : () -> ()
    %cst_37 = arith.constant dense<0.000000e+00> : vector<8x8xf32>
    %67 = tpu.matmul %62, %64, %cst_37 {dimension_numbers = #tpu.dot_dimension_numbers<[1], [1], [0], [0], [0, 0, 1, 0], [], []>} : vector<8x8xbf16>, vector<8x8xbf16>, vector<8x8xf32> -> vector<8x8xf32>
    "tpu.trace_stop"() : () -> ()
    %68 = vector.shape_cast %62 : vector<8x8xbf16> to vector<8x1x8xbf16>
    "tpu.trace_start"() <{level = 10 : i32, message = "imd,ijd->imj"}> : () -> ()
    %cst_38 = arith.constant dense<0.000000e+00> : vector<8x1x8xf32>
    %69 = tpu.matmul %68, %7, %cst_38 {dimension_numbers = #tpu.dot_dimension_numbers<[2], [2], [1], [1], [0, 0, 0, 1, 1, 1], [0], [0]>} : vector<8x1x8xbf16>, vector<8x8x8xbf16>, vector<8x1x8xf32> -> vector<8x1x8xf32>
    "tpu.trace_stop"() : () -> ()
    %70 = vector.shape_cast %69 : vector<8x1x8xf32> to vector<8x8xf32>
    %71 = arith.addf %67, %70 : vector<8x8xf32>
    %cst_39 = arith.constant 0.353553385 : f32
    %72 = vector.broadcast %cst_39 : f32 to vector<8x8xf32>
    %73 = arith.mulf %71, %72 : vector<8x8xf32>
    %74 = vector.broadcast %6 : vector<1x8xf32> to vector<8x8xf32>
    %75 = arith.addf %73, %74 : vector<8x8xf32>
    %cst_40 = arith.constant dense<0xFF800000> : vector<8xf32>
    %76 = vector.multi_reduction <maximumf>, %75, %cst_40 [1] : vector<8x8xf32> to vector<8xf32>
    %77 = vector.shape_cast %76 : vector<8xf32> to vector<8x1xf32>
    %78 = vector.broadcast %77 : vector<8x1xf32> to vector<8x8xf32>
    %79 = arith.subf %75, %78 : vector<8x8xf32>
    %80 = math.exp %79 : vector<8x8xf32>
    %cst_41 = arith.constant dense<0.000000e+00> : vector<8xf32>
    %81 = vector.multi_reduction <add>, %80, %cst_41 [1] : vector<8x8xf32> to vector<8xf32>
    %82 = vector.shape_cast %81 : vector<8xf32> to vector<8x1xf32>
    %83 = tpu.reciprocal %82 {approx = true} : vector<8x1xf32> -> vector<8x1xf32>
    %84 = vector.broadcast %83 : vector<8x1xf32> to vector<8x8xf32>
    %85 = arith.mulf %80, %84 : vector<8x8xf32>
    %86 = arith.truncf %85 : vector<8x8xf32> to vector<8x8xbf16>
    "tpu.trace_start"() <{level = 10 : i32, message = "ij,jd->id"}> : () -> ()
    %cst_42 = arith.constant dense<0.000000e+00> : vector<8x8xf32>
    %87 = tpu.matmul %86, %66, %cst_42 {dimension_numbers = #tpu.dot_dimension_numbers<[1], [0], [0], [1], [0, 0, 1, 1], [], []>} : vector<8x8xbf16>, vector<8x8xbf16>, vector<8x8xf32> -> vector<8x8xf32>
    "tpu.trace_stop"() : () -> ()
    %88 = vector.shape_cast %86 : vector<8x8xbf16> to vector<8x1x8xbf16>
    "tpu.trace_start"() <{level = 10 : i32, message = "imj,ijd->imd"}> : () -> ()
    %cst_43 = arith.constant dense<0.000000e+00> : vector<8x1x8xf32>
    %89 = tpu.matmul %88, %7, %cst_43 {dimension_numbers = #tpu.dot_dimension_numbers<[2], [1], [1], [2], [0, 0, 0, 1, 1, 2], [0], [0]>} : vector<8x1x8xbf16>, vector<8x8x8xbf16>, vector<8x1x8xf32> -> vector<8x1x8xf32>
    "tpu.trace_stop"() : () -> ()
    %90 = vector.shape_cast %89 : vector<8x1x8xf32> to vector<8x8xf32>
    %91 = arith.addf %87, %90 : vector<8x8xf32>
    %c0_44 = arith.constant 0 : index
    %c8 = arith.constant 8 : index
    %92 = vector.load %arg29[%c0_44, %c8] : memref<8x32xf32, #tpu.memory_space<vmem>>, vector<8x8xf32>
    tpu.vector_store %arg29[%c0_44, %c8], %91 {strides = array<i32>} : memref<8x32xf32, #tpu.memory_space<vmem>>, vector<8x8xf32>,
    %93 = vector.extract_strided_slice %14 {offsets = [0, 16], sizes = [8, 8], strides = [1, 1]} : vector<8x32xf32> to vector<8x8xf32>
    %94 = arith.truncf %93 : vector<8x8xf32> to vector<8x8xbf16>
    %95 = vector.extract_strided_slice %21 {offsets = [0, 16], sizes = [8, 8], strides = [1, 1]} : vector<8x32xf32> to vector<8x8xf32>
    %96 = arith.truncf %95 : vector<8x8xf32> to vector<8x8xbf16>
    %97 = vector.extract_strided_slice %28 {offsets = [0, 16], sizes = [8, 8], strides = [1, 1]} : vector<8x32xf32> to vector<8x8xf32>
    %98 = arith.truncf %97 : vector<8x8xf32> to vector<8x8xbf16>
    "tpu.trace_start"() <{level = 10 : i32, message = "id,jd->ij"}> : () -> ()
    %cst_45 = arith.constant dense<0.000000e+00> : vector<8x8xf32>
    %99 = tpu.matmul %94, %96, %cst_45 {dimension_numbers = #tpu.dot_dimension_numbers<[1], [1], [0], [0], [0, 0, 1, 0], [], []>} : vector<8x8xbf16>, vector<8x8xbf16>, vector<8x8xf32> -> vector<8x8xf32>
    "tpu.trace_stop"() : () -> ()
    %100 = vector.shape_cast %94 : vector<8x8xbf16> to vector<8x1x8xbf16>
    "tpu.trace_start"() <{level = 10 : i32, message = "imd,ijd->imj"}> : () -> ()
    %cst_46 = arith.constant dense<0.000000e+00> : vector<8x1x8xf32>
    %101 = tpu.matmul %100, %7, %cst_46 {dimension_numbers = #tpu.dot_dimension_numbers<[2], [2], [1], [1], [0, 0, 0, 1, 1, 1], [0], [0]>} : vector<8x1x8xbf16>, vector<8x8x8xbf16>, vector<8x1x8xf32> -> vector<8x1x8xf32>
    "tpu.trace_stop"() : () -> ()
    %102 = vector.shape_cast %101 : vector<8x1x8xf32> to vector<8x8xf32>
    %103 = arith.addf %99, %102 : vector<8x8xf32>
    %cst_47 = arith.constant 0.353553385 : f32
    %104 = vector.broadcast %cst_47 : f32 to vector<8x8xf32>
    %105 = arith.mulf %103, %104 : vector<8x8xf32>
    %106 = vector.broadcast %6 : vector<1x8xf32> to vector<8x8xf32>
    %107 = arith.addf %105, %106 : vector<8x8xf32>
    %cst_48 = arith.constant dense<0xFF800000> : vector<8xf32>
    %108 = vector.multi_reduction <maximumf>, %107, %cst_48 [1] : vector<8x8xf32> to vector<8xf32>
    %109 = vector.shape_cast %108 : vector<8xf32> to vector<8x1xf32>
    %110 = vector.broadcast %109 : vector<8x1xf32> to vector<8x8xf32>
    %111 = arith.subf %107, %110 : vector<8x8xf32>
    %112 = math.exp %111 : vector<8x8xf32>
    %cst_49 = arith.constant dense<0.000000e+00> : vector<8xf32>
    %113 = vector.multi_reduction <add>, %112, %cst_49 [1] : vector<8x8xf32> to vector<8xf32>
    %114 = vector.shape_cast %113 : vector<8xf32> to vector<8x1xf32>
    %115 = tpu.reciprocal %114 {approx = true} : vector<8x1xf32> -> vector<8x1xf32>
    %116 = vector.broadcast %115 : vector<8x1xf32> to vector<8x8xf32>
    %117 = arith.mulf %112, %116 : vector<8x8xf32>
    %118 = arith.truncf %117 : vector<8x8xf32> to vector<8x8xbf16>
    "tpu.trace_start"() <{level = 10 : i32, message = "ij,jd->id"}> : () -> ()
    %cst_50 = arith.constant dense<0.000000e+00> : vector<8x8xf32>
    %119 = tpu.matmul %118, %98, %cst_50 {dimension_numbers = #tpu.dot_dimension_numbers<[1], [0], [0], [1], [0, 0, 1, 1], [], []>} : vector<8x8xbf16>, vector<8x8xbf16>, vector<8x8xf32> -> vector<8x8xf32>
    "tpu.trace_stop"() : () -> ()
    %120 = vector.shape_cast %118 : vector<8x8xbf16> to vector<8x1x8xbf16>
    "tpu.trace_start"() <{level = 10 : i32, message = "imj,ijd->imd"}> : () -> ()
    %cst_51 = arith.constant dense<0.000000e+00> : vector<8x1x8xf32>
    %121 = tpu.matmul %120, %7, %cst_51 {dimension_numbers = #tpu.dot_dimension_numbers<[2], [1], [1], [2], [0, 0, 0, 1, 1, 2], [0], [0]>} : vector<8x1x8xbf16>, vector<8x8x8xbf16>, vector<8x1x8xf32> -> vector<8x1x8xf32>
    "tpu.trace_stop"() : () -> ()
    %122 = vector.shape_cast %121 : vector<8x1x8xf32> to vector<8x8xf32>
    %123 = arith.addf %119, %122 : vector<8x8xf32>
    %c0_52 = arith.constant 0 : index
    %c16 = arith.constant 16 : index
    %124 = vector.load %arg29[%c0_52, %c16] : memref<8x32xf32, #tpu.memory_space<vmem>>, vector<8x8xf32>
    tpu.vector_store %arg29[%c0_52, %c16], %123 {strides = array<i32>} : memref<8x32xf32, #tpu.memory_space<vmem>>, vector<8x8xf32>,
    %125 = vector.extract_strided_slice %14 {offsets = [0, 24], sizes = [8, 8], strides = [1, 1]} : vector<8x32xf32> to vector<8x8xf32>
    %126 = arith.truncf %125 : vector<8x8xf32> to vector<8x8xbf16>
    %127 = vector.extract_strided_slice %21 {offsets = [0, 24], sizes = [8, 8], strides = [1, 1]} : vector<8x32xf32> to vector<8x8xf32>
    %128 = arith.truncf %127 : vector<8x8xf32> to vector<8x8xbf16>
    %129 = vector.extract_strided_slice %28 {offsets = [0, 24], sizes = [8, 8], strides = [1, 1]} : vector<8x32xf32> to vector<8x8xf32>
    %130 = arith.truncf %129 : vector<8x8xf32> to vector<8x8xbf16>
    "tpu.trace_start"() <{level = 10 : i32, message = "id,jd->ij"}> : () -> ()
    %cst_53 = arith.constant dense<0.000000e+00> : vector<8x8xf32>
    %131 = tpu.matmul %126, %128, %cst_53 {dimension_numbers = #tpu.dot_dimension_numbers<[1], [1], [0], [0], [0, 0, 1, 0], [], []>} : vector<8x8xbf16>, vector<8x8xbf16>, vector<8x8xf32> -> vector<8x8xf32>
    "tpu.trace_stop"() : () -> ()
    %132 = vector.shape_cast %126 : vector<8x8xbf16> to vector<8x1x8xbf16>
    "tpu.trace_start"() <{level = 10 : i32, message = "imd,ijd->imj"}> : () -> ()
    %cst_54 = arith.constant dense<0.000000e+00> : vector<8x1x8xf32>
    %133 = tpu.matmul %132, %7, %cst_54 {dimension_numbers = #tpu.dot_dimension_numbers<[2], [2], [1], [1], [0, 0, 0, 1, 1, 1], [0], [0]>} : vector<8x1x8xbf16>, vector<8x8x8xbf16>, vector<8x1x8xf32> -> vector<8x1x8xf32>
    "tpu.trace_stop"() : () -> ()
    %134 = vector.shape_cast %133 : vector<8x1x8xf32> to vector<8x8xf32>
    %135 = arith.addf %131, %134 : vector<8x8xf32>
    %cst_55 = arith.constant 0.353553385 : f32
    %136 = vector.broadcast %cst_55 : f32 to vector<8x8xf32>
    %137 = arith.mulf %135, %136 : vector<8x8xf32>
    %138 = vector.broadcast %6 : vector<1x8xf32> to vector<8x8xf32>
    %139 = arith.addf %137, %138 : vector<8x8xf32>
    %cst_56 = arith.constant dense<0xFF800000> : vector<8xf32>
    %140 = vector.multi_reduction <maximumf>, %139, %cst_56 [1] : vector<8x8xf32> to vector<8xf32>
    %141 = vector.shape_cast %140 : vector<8xf32> to vector<8x1xf32>
    %142 = vector.broadcast %141 : vector<8x1xf32> to vector<8x8xf32>
    %143 = arith.subf %139, %142 : vector<8x8xf32>
    %144 = math.exp %143 : vector<8x8xf32>
    %cst_57 = arith.constant dense<0.000000e+00> : vector<8xf32>
    %145 = vector.multi_reduction <add>, %144, %cst_57 [1] : vector<8x8xf32> to vector<8xf32>
    %146 = vector.shape_cast %145 : vector<8xf32> to vector<8x1xf32>
    %147 = tpu.reciprocal %146 {approx = true} : vector<8x1xf32> -> vector<8x1xf32>
    %148 = vector.broadcast %147 : vector<8x1xf32> to vector<8x8xf32>
    %149 = arith.mulf %144, %148 : vector<8x8xf32>
    %150 = arith.truncf %149 : vector<8x8xf32> to vector<8x8xbf16>
    "tpu.trace_start"() <{level = 10 : i32, message = "ij,jd->id"}> : () -> ()
    %cst_58 = arith.constant dense<0.000000e+00> : vector<8x8xf32>
    %151 = tpu.matmul %150, %130, %cst_58 {dimension_numbers = #tpu.dot_dimension_numbers<[1], [0], [0], [1], [0, 0, 1, 1], [], []>} : vector<8x8xbf16>, vector<8x8xbf16>, vector<8x8xf32> -> vector<8x8xf32>
    "tpu.trace_stop"() : () -> ()
    %152 = vector.shape_cast %150 : vector<8x8xbf16> to vector<8x1x8xbf16>
    "tpu.trace_start"() <{level = 10 : i32, message = "imj,ijd->imd"}> : () -> ()
    %cst_59 = arith.constant dense<0.000000e+00> : vector<8x1x8xf32>
    %153 = tpu.matmul %152, %7, %cst_59 {dimension_numbers = #tpu.dot_dimension_numbers<[2], [1], [1], [2], [0, 0, 0, 1, 1, 2], [0], [0]>} : vector<8x1x8xbf16>, vector<8x8x8xbf16>, vector<8x1x8xf32> -> vector<8x1x8xf32>
    "tpu.trace_stop"() : () -> ()
    %154 = vector.shape_cast %153 : vector<8x1x8xf32> to vector<8x8xf32>
    %155 = arith.addf %151, %154 : vector<8x8xf32>
    %c0_60 = arith.constant 0 : index
    %c24 = arith.constant 24 : index
    %156 = vector.load %arg29[%c0_60, %c24] : memref<8x32xf32, #tpu.memory_space<vmem>>, vector<8x8xf32>
    tpu.vector_store %arg29[%c0_60, %c24], %155 {strides = array<i32>} : memref<8x32xf32, #tpu.memory_space<vmem>>, vector<8x8xf32>,
    %c0_61 = arith.constant 0 : index
    %c0_62 = arith.constant 0 : index
    %157 = vector.load %arg29[%c0_61, %c0_62] : memref<8x32xf32, #tpu.memory_space<vmem>>, vector<8x32xf32>
    %158 = arith.truncf %157 : vector<8x32xf32> to vector<8x32xbf16>
    %c0_63 = arith.constant 0 : index
    %c0_64 = arith.constant 0 : index
    %c0_65 = arith.constant 0 : index
    %159 = vector.load %arg13[%c0_63, %c0_64, %c0_65] : memref<1x32x32xbf16, #tpu.memory_space<vmem>>, vector<1x32x32xbf16>
    %160 = vector.shape_cast %159 : vector<1x32x32xbf16> to vector<32x32xbf16>
    %cst_66 = arith.constant dense<0.000000e+00> : vector<8x32xf32>
    %161 = tpu.matmul %158, %160, %cst_66 {dimension_numbers = #tpu.dot_dimension_numbers<[1], [0], [0], [1], [0, 0, 1, 1], [], []>} : vector<8x32xbf16>, vector<32x32xbf16>, vector<8x32xf32> -> vector<8x32xf32>
    %c0_67 = arith.constant 0 : index
    %c0_68 = arith.constant 0 : index
    %c0_69 = arith.constant 0 : index
    %162 = vector.load %arg14[%c0_67, %c0_68, %c0_69] : memref<1x1x32xf32, #tpu.memory_space<vmem>>, vector<1x1x32xf32>
    %163 = vector.shape_cast %162 : vector<1x1x32xf32> to vector<1x32xf32>
    %164 = vector.broadcast %163 : vector<1x32xf32> to vector<8x32xf32>
    %165 = arith.addf %161, %164 : vector<8x32xf32>
    %166 = arith.addf %165, %3 : vector<8x32xf32>
    %c0_70 = arith.constant 0 : index
    %c0_71 = arith.constant 0 : index
    %c0_72 = arith.constant 0 : index
    %167 = vector.load %arg15[%c0_70, %c0_71, %c0_72] : memref<1x1x32xf32, #tpu.memory_space<vmem>>, vector<1x1x32xf32>
    %168 = vector.shape_cast %167 : vector<1x1x32xf32> to vector<1x32xf32>
    %c0_73 = arith.constant 0 : index
    %c0_74 = arith.constant 0 : index
    %c0_75 = arith.constant 0 : index
    %169 = vector.load %arg16[%c0_73, %c0_74, %c0_75] : memref<1x1x32xf32, #tpu.memory_space<vmem>>, vector<1x1x32xf32>
    %170 = vector.shape_cast %169 : vector<1x1x32xf32> to vector<1x32xf32>
    %cst_76 = arith.constant dense<0.000000e+00> : vector<8xf32>
    %171 = vector.multi_reduction <add>, %166, %cst_76 [1] : vector<8x32xf32> to vector<8xf32>
    %172 = vector.shape_cast %171 : vector<8xf32> to vector<8x1xf32>
    %cst_77 = arith.constant 3.200000e+01 : f32
    %173 = vector.broadcast %cst_77 : f32 to vector<8x1xf32>
    %174 = arith.divf %172, %173 : vector<8x1xf32>
    %175 = vector.broadcast %174 : vector<8x1xf32> to vector<8x32xf32>
    %176 = arith.subf %166, %175 : vector<8x32xf32>
    %177 = arith.mulf %176, %176 : vector<8x32xf32>
    %cst_78 = arith.constant dense<0.000000e+00> : vector<8xf32>
    %178 = vector.multi_reduction <add>, %177, %cst_78 [1] : vector<8x32xf32> to vector<8xf32>
    %179 = vector.shape_cast %178 : vector<8xf32> to vector<8x1xf32>
    %cst_79 = arith.constant 3.200000e+01 : f32
    %180 = vector.broadcast %cst_79 : f32 to vector<8x1xf32>
    %181 = arith.divf %179, %180 : vector<8x1xf32>
    %182 = vector.broadcast %174 : vector<8x1xf32> to vector<8x32xf32>
    %183 = arith.subf %166, %182 : vector<8x32xf32>
    %cst_80 = arith.constant 9.99999996E-13 : f32
    %184 = vector.broadcast %cst_80 : f32 to vector<8x1xf32>
    %185 = arith.addf %181, %184 : vector<8x1xf32>
    %186 = math.rsqrt %185 : vector<8x1xf32>
    %187 = vector.broadcast %186 : vector<8x1xf32> to vector<8x32xf32>
    %188 = arith.mulf %183, %187 : vector<8x32xf32>
    %189 = vector.broadcast %168 : vector<1x32xf32> to vector<8x32xf32>
    %190 = arith.mulf %188, %189 : vector<8x32xf32>
    %191 = vector.broadcast %170 : vector<1x32xf32> to vector<8x32xf32>
    %192 = arith.addf %190, %191 : vector<8x32xf32>
    %193 = arith.truncf %192 : vector<8x32xf32> to vector<8x32xbf16>
    %c0_81 = arith.constant 0 : index
    %c0_82 = arith.constant 0 : index
    %c0_83 = arith.constant 0 : index
    %194 = vector.load %arg17[%c0_81, %c0_82, %c0_83] : memref<1x32x64xbf16, #tpu.memory_space<vmem>>, vector<1x32x64xbf16>
    %195 = vector.shape_cast %194 : vector<1x32x64xbf16> to vector<32x64xbf16>
    %cst_84 = arith.constant dense<0.000000e+00> : vector<8x64xf32>
    %196 = tpu.matmul %193, %195, %cst_84 {dimension_numbers = #tpu.dot_dimension_numbers<[1], [0], [0], [1], [0, 0, 1, 1], [], []>} : vector<8x32xbf16>, vector<32x64xbf16>, vector<8x64xf32> -> vector<8x64xf32>
    %c0_85 = arith.constant 0 : index
    %c0_86 = arith.constant 0 : index
    %c0_87 = arith.constant 0 : index
    %197 = vector.load %arg18[%c0_85, %c0_86, %c0_87] : memref<1x1x64xf32, #tpu.memory_space<vmem>>, vector<1x1x64xf32>
    %198 = vector.shape_cast %197 : vector<1x1x64xf32> to vector<1x64xf32>
    %199 = vector.broadcast %198 : vector<1x64xf32> to vector<8x64xf32>
    %200 = arith.addf %196, %199 : vector<8x64xf32>
    %cst_88 = arith.constant 5.000000e-01 : f32
    %201 = vector.broadcast %cst_88 : f32 to vector<8x64xf32>
    %202 = arith.mulf %201, %200 : vector<8x64xf32>
    %cst_89 = arith.constant 4.471500e-02 : f32
    %203 = vector.broadcast %cst_89 : f32 to vector<8x64xf32>
    %204 = arith.mulf %203, %200 : vector<8x64xf32>
    %205 = arith.mulf %204, %200 : vector<8x64xf32>
    %206 = arith.mulf %205, %200 : vector<8x64xf32>
    %207 = arith.addf %200, %206 : vector<8x64xf32>
    %cst_90 = arith.constant 0.797884583 : f32
    %208 = vector.broadcast %cst_90 : f32 to vector<8x64xf32>
    %209 = arith.mulf %208, %207 : vector<8x64xf32>
    %210 = math.tanh %209 : vector<8x64xf32>
    %cst_91 = arith.constant 1.000000e+00 : f32
    %211 = vector.broadcast %cst_91 : f32 to vector<8x64xf32>
    %212 = arith.addf %211, %210 : vector<8x64xf32>
    %213 = arith.mulf %202, %212 : vector<8x64xf32>
    %214 = arith.truncf %213 : vector<8x64xf32> to vector<8x64xbf16>
    %c0_92 = arith.constant 0 : index
    %c0_93 = arith.constant 0 : index
    %c0_94 = arith.constant 0 : index
    %215 = vector.load %arg19[%c0_92, %c0_93, %c0_94] : memref<1x64x32xbf16, #tpu.memory_space<vmem>>, vector<1x64x32xbf16>
    %216 = vector.shape_cast %215 : vector<1x64x32xbf16> to vector<64x32xbf16>
    %cst_95 = arith.constant dense<0.000000e+00> : vector<8x32xf32>
    %217 = tpu.matmul %214, %216, %cst_95 {dimension_numbers = #tpu.dot_dimension_numbers<[1], [0], [0], [1], [0, 0, 1, 1], [], []>} : vector<8x64xbf16>, vector<64x32xbf16>, vector<8x32xf32> -> vector<8x32xf32>
    %c0_96 = arith.constant 0 : index
    %c0_97 = arith.constant 0 : index
    %c0_98 = arith.constant 0 : index
    %218 = vector.load %arg20[%c0_96, %c0_97, %c0_98] : memref<1x1x32xf32, #tpu.memory_space<vmem>>, vector<1x1x32xf32>
    %219 = vector.shape_cast %218 : vector<1x1x32xf32> to vector<1x32xf32>
    %220 = vector.broadcast %219 : vector<1x32xf32> to vector<8x32xf32>
    %221 = arith.addf %217, %220 : vector<8x32xf32>
    %222 = arith.addf %221, %192 : vector<8x32xf32>
    %c0_99 = arith.constant 0 : index
    %c0_100 = arith.constant 0 : index
    %c0_101 = arith.constant 0 : index
    %223 = vector.load %arg21[%c0_99, %c0_100, %c0_101] : memref<1x1x32xf32, #tpu.memory_space<vmem>>, vector<1x1x32xf32>
    %224 = vector.shape_cast %223 : vector<1x1x32xf32> to vector<1x32xf32>
    %c0_102 = arith.constant 0 : index
    %c0_103 = arith.constant 0 : index
    %c0_104 = arith.constant 0 : index
    %225 = vector.load %arg22[%c0_102, %c0_103, %c0_104] : memref<1x1x32xf32, #tpu.memory_space<vmem>>, vector<1x1x32xf32>
    %226 = vector.shape_cast %225 : vector<1x1x32xf32> to vector<1x32xf32>
    %cst_105 = arith.constant dense<0.000000e+00> : vector<8xf32>
    %227 = vector.multi_reduction <add>, %222, %cst_105 [1] : vector<8x32xf32> to vector<8xf32>
    %228 = vector.shape_cast %227 : vector<8xf32> to vector<8x1xf32>
    %cst_106 = arith.constant 3.200000e+01 : f32
    %229 = vector.broadcast %cst_106 : f32 to vector<8x1xf32>
    %230 = arith.divf %228, %229 : vector<8x1xf32>
    %231 = vector.broadcast %230 : vector<8x1xf32> to vector<8x32xf32>
    %232 = arith.subf %222, %231 : vector<8x32xf32>
    %233 = arith.mulf %232, %232 : vector<8x32xf32>
    %cst_107 = arith.constant dense<0.000000e+00> : vector<8xf32>
    %234 = vector.multi_reduction <add>, %233, %cst_107 [1] : vector<8x32xf32> to vector<8xf32>
    %235 = vector.shape_cast %234 : vector<8xf32> to vector<8x1xf32>
    %cst_108 = arith.constant 3.200000e+01 : f32
    %236 = vector.broadcast %cst_108 : f32 to vector<8x1xf32>
    %237 = arith.divf %235, %236 : vector<8x1xf32>
    %238 = vector.broadcast %230 : vector<8x1xf32> to vector<8x32xf32>
    %239 = arith.subf %222, %238 : vector<8x32xf32>
    %cst_109 = arith.constant 9.99999996E-13 : f32
    %240 = vector.broadcast %cst_109 : f32 to vector<8x1xf32>
    %241 = arith.addf %237, %240 : vector<8x1xf32>
    %242 = math.rsqrt %241 : vector<8x1xf32>
    %243 = vector.broadcast %242 : vector<8x1xf32> to vector<8x32xf32>
    %244 = arith.mulf %239, %243 : vector<8x32xf32>
    %245 = vector.broadcast %224 : vector<1x32xf32> to vector<8x32xf32>
    %246 = arith.mulf %244, %245 : vector<8x32xf32>
    %247 = vector.broadcast %226 : vector<1x32xf32> to vector<8x32xf32>
    %248 = arith.addf %246, %247 : vector<8x32xf32>
    %c0_110 = arith.constant 0 : index
    %c0_111 = arith.constant 0 : index
    %249 = vector.load %arg28[%c0_110, %c0_111] : memref<8x32xf32, #tpu.memory_space<vmem>>, vector<8x32xf32>
    tpu.vector_store %arg28[%c0_110, %c0_111], %248 {strides = array<i32>} : memref<8x32xf32, #tpu.memory_space<vmem>>, vector<8x32xf32>,
    %c1_i32 = arith.constant 1 : i32
    %250 = arith.cmpi eq, %arg1, %c1_i32 : i32
    %251 = arith.extui %250 : i1 to i32
    %c0_i32_112 = arith.constant 0 : i32
    %252 = arith.cmpi ne, %251, %c0_i32_112 : i32
    scf.if %252 {
      %253 = vector.extract_strided_slice %248 {offsets = [0, 0], sizes = [1, 32], strides = [1, 1]} : vector<8x32xf32> to vector<1x32xf32>
      %c0_113 = arith.constant 0 : index
      %c0_114 = arith.constant 0 : index
      %254 = vector.load %arg23[%c0_113, %c0_114] : memref<32x32xf32, #tpu.memory_space<vmem>>, vector<32x32xf32>
      %cst_115 = arith.constant dense<0.000000e+00> : vector<1x32xf32>
      %255 = tpu.matmul %253, %254, %cst_115 {dimension_numbers = #tpu.dot_dimension_numbers<[1], [0], [0], [1], [0, 0, 1, 1], [], []>} : vector<1x32xf32>, vector<32x32xf32>, vector<1x32xf32> -> vector<1x32xf32>
      %c0_116 = arith.constant 0 : index
      %c0_117 = arith.constant 0 : index
      %256 = vector.load %arg24[%c0_116, %c0_117] : memref<1x32xf32, #tpu.memory_space<vmem>>, vector<1x32xf32>
      %257 = arith.addf %255, %256 : vector<1x32xf32>
      %258 = math.tanh %257 : vector<1x32xf32>
      %c0_118 = arith.constant 0 : index
      %c0_119 = arith.constant 0 : index
      %259 = vector.load %arg25[%c0_118, %c0_119] : memref<32x128xf32, #tpu.memory_space<vmem>>, vector<32x128xf32>
      %cst_120 = arith.constant dense<0.000000e+00> : vector<1x128xf32>
      %260 = tpu.matmul %258, %259, %cst_120 {dimension_numbers = #tpu.dot_dimension_numbers<[1], [0], [0], [1], [0, 0, 1, 1], [], []>} : vector<1x32xf32>, vector<32x128xf32>, vector<1x128xf32> -> vector<1x128xf32>
      %c0_121 = arith.constant 0 : index
      %c0_122 = arith.constant 0 : index
      %261 = vector.load %arg26[%c0_121, %c0_122] : memref<1x128xf32, #tpu.memory_space<vmem>>, vector<1x128xf32>
      %262 = arith.addf %260, %261 : vector<1x128xf32>
      %263 = vector.shape_cast %262 : vector<1x128xf32> to vector<1x1x128xf32>
      %c0_123 = arith.constant 0 : index
      %c0_124 = arith.constant 0 : index
      %c0_125 = arith.constant 0 : index
      %264 = vector.load %arg27[%c0_123, %c0_124, %c0_125] : memref<1x1x128xf32, #tpu.memory_space<vmem>>, vector<1x1x128xf32>
      tpu.vector_store %arg27[%c0_123, %c0_124, %c0_125], %263 {strides = array<i32>} : memref<1x1x128xf32, #tpu.memory_space<vmem>>, vector<1x1x128xf32>,
    } else {
    }
    return
  }
  func.func @transform_0(%arg0: i32, %arg1: i32) -> (i32, i32, i32) {
    %c0_i32 = arith.constant 0 : i32
    %c0_i32_0 = arith.constant 0 : i32
    %c0_i32_1 = arith.constant 0 : i32
    return %arg0, %c0_i32, %c0_i32_0 : i32, i32, i32
  }
  func.func @transform_1(%arg0: i32, %arg1: i32) -> (i32, i32, i32) {
    %c0_i32 = arith.constant 0 : i32
    %c0_i32_0 = arith.constant 0 : i32
    %c0_i32_1 = arith.constant 0 : i32
    return %arg0, %c0_i32, %c0_i32_0 : i32, i32, i32
  }
  func.func @transform_2(%arg0: i32, %arg1: i32) -> (i32, i32, i32) {
    %c0_i32 = arith.constant 0 : i32
    %c0_i32_0 = arith.constant 0 : i32
    %c0_i32_1 = arith.constant 0 : i32
    %c0_i32_2 = arith.constant 0 : i32
    return %c0_i32, %c0_i32_0, %c0_i32_1 : i32, i32, i32
  }
  func.func @transform_3(%arg0: i32, %arg1: i32) -> (i32, i32) {
    %c0_i32 = arith.constant 0 : i32
    %c0_i32_0 = arith.constant 0 : i32
    %c0_i32_1 = arith.constant 0 : i32
    return %c0_i32, %c0_i32_0 : i32, i32
  }
  func.func @transform_4(%arg0: i32, %arg1: i32) -> (i32, i32) {
    %c0_i32 = arith.constant 0 : i32
    %c0_i32_0 = arith.constant 0 : i32
    %c0_i32_1 = arith.constant 0 : i32
    return %c0_i32, %c0_i32_0 : i32, i32
  }
  func.func @transform_5(%arg0: i32, %arg1: i32) -> (i32, i32, i32) {
    %c0_i32 = arith.constant 0 : i32
    %c0_i32_0 = arith.constant 0 : i32
    %c0_i32_1 = arith.constant 0 : i32
    return %arg1, %c0_i32, %c0_i32_0 : i32, i32, i32
  }
  func.func @transform_6(%arg0: i32, %arg1: i32) -> (i32, i32, i32) {
    %c0_i32 = arith.constant 0 : i32
    %c0_i32_0 = arith.constant 0 : i32
    %c0_i32_1 = arith.constant 0 : i32
    return %arg1, %c0_i32, %c0_i32_0 : i32, i32, i32
  }
  func.func @transform_7(%arg0: i32, %arg1: i32) -> (i32, i32, i32) {
    %c0_i32 = arith.constant 0 : i32
    %c0_i32_0 = arith.constant 0 : i32
    %c0_i32_1 = arith.constant 0 : i32
    return %arg1, %c0_i32, %c0_i32_0 : i32, i32, i32
  }
  func.func @transform_8(%arg0: i32, %arg1: i32) -> (i32, i32, i32) {
    %c0_i32 = arith.constant 0 : i32
    %c0_i32_0 = arith.constant 0 : i32
    %c0_i32_1 = arith.constant 0 : i32
    return %arg1, %c0_i32, %c0_i32_0 : i32, i32, i32
  }
  func.func @transform_9(%arg0: i32, %arg1: i32) -> (i32, i32, i32) {
    %c0_i32 = arith.constant 0 : i32
    %c0_i32_0 = arith.constant 0 : i32
    %c0_i32_1 = arith.constant 0 : i32
    return %arg1, %c0_i32, %c0_i32_0 : i32, i32, i32
  }
  func.func @transform_10(%arg0: i32, %arg1: i32) -> (i32, i32, i32) {
    %c0_i32 = arith.constant 0 : i32
    %c0_i32_0 = arith.constant 0 : i32
    %c0_i32_1 = arith.constant 0 : i32
    return %arg1, %c0_i32, %c0_i32_0 : i32, i32, i32
  }
  func.func @transform_11(%arg0: i32, %arg1: i32) -> (i32, i32, i32) {
    %c0_i32 = arith.constant 0 : i32
    %c0_i32_0 = arith.constant 0 : i32
    %c0_i32_1 = arith.constant 0 : i32
    return %arg1, %c0_i32, %c0_i32_0 : i32, i32, i32
  }
  func.func @transform_12(%arg0: i32, %arg1: i32) -> (i32, i32, i32) {
    %c0_i32 = arith.constant 0 : i32
    %c0_i32_0 = arith.constant 0 : i32
    %c0_i32_1 = arith.constant 0 : i32
    return %arg1, %c0_i32, %c0_i32_0 : i32, i32, i32
  }
  func.func @transform_13(%arg0: i32, %arg1: i32) -> (i32, i32, i32) {
    %c0_i32 = arith.constant 0 : i32
    %c0_i32_0 = arith.constant 0 : i32
    %c0_i32_1 = arith.constant 0 : i32
    return %arg1, %c0_i32, %c0_i32_0 : i32, i32, i32
  }
  func.func @transform_14(%arg0: i32, %arg1: i32) -> (i32, i32, i32) {
    %c0_i32 = arith.constant 0 : i32
    %c0_i32_0 = arith.constant 0 : i32
    %c0_i32_1 = arith.constant 0 : i32
    return %arg1, %c0_i32, %c0_i32_0 : i32, i32, i32
  }
  func.func @transform_15(%arg0: i32, %arg1: i32) -> (i32, i32, i32) {
    %c0_i32 = arith.constant 0 : i32
    %c0_i32_0 = arith.constant 0 : i32
    %c0_i32_1 = arith.constant 0 : i32
    return %arg1, %c0_i32, %c0_i32_0 : i32, i32, i32
  }
  func.func @transform_16(%arg0: i32, %arg1: i32) -> (i32, i32, i32) {
    %c0_i32 = arith.constant 0 : i32
    %c0_i32_0 = arith.constant 0 : i32
    %c0_i32_1 = arith.constant 0 : i32
    return %arg1, %c0_i32, %c0_i32_0 : i32, i32, i32
  }
  func.func @transform_17(%arg0: i32, %arg1: i32) -> (i32, i32, i32) {
    %c0_i32 = arith.constant 0 : i32
    %c0_i32_0 = arith.constant 0 : i32
    %c0_i32_1 = arith.constant 0 : i32
    return %arg1, %c0_i32, %c0_i32_0 : i32, i32, i32
  }
  func.func @transform_18(%arg0: i32, %arg1: i32) -> (i32, i32, i32) {
    %c0_i32 = arith.constant 0 : i32
    %c0_i32_0 = arith.constant 0 : i32
    %c0_i32_1 = arith.constant 0 : i32
    return %arg1, %c0_i32, %c0_i32_0 : i32, i32, i32
  }
  func.func @transform_19(%arg0: i32, %arg1: i32) -> (i32, i32, i32) {
    %c0_i32 = arith.constant 0 : i32
    %c0_i32_0 = arith.constant 0 : i32
    %c0_i32_1 = arith.constant 0 : i32
    return %arg1, %c0_i32, %c0_i32_0 : i32, i32, i32
  }
  func.func @transform_20(%arg0: i32, %arg1: i32) -> (i32, i32, i32) {
    %c0_i32 = arith.constant 0 : i32
    %c0_i32_0 = arith.constant 0 : i32
    %c0_i32_1 = arith.constant 0 : i32
    return %arg1, %c0_i32, %c0_i32_0 : i32, i32, i32
  }
  func.func @transform_21(%arg0: i32, %arg1: i32) -> (i32, i32) {
    %c0_i32 = arith.constant 0 : i32
    %c0_i32_0 = arith.constant 0 : i32
    %c0_i32_1 = arith.constant 0 : i32
    return %c0_i32, %c0_i32_0 : i32, i32
  }
  func.func @transform_22(%arg0: i32, %arg1: i32) -> (i32, i32) {
    %c0_i32 = arith.constant 0 : i32
    %c0_i32_0 = arith.constant 0 : i32
    %c0_i32_1 = arith.constant 0 : i32
    return %c0_i32, %c0_i32_0 : i32, i32
  }
  func.func @transform_23(%arg0: i32, %arg1: i32) -> (i32, i32) {
    %c0_i32 = arith.constant 0 : i32
    %c0_i32_0 = arith.constant 0 : i32
    %c0_i32_1 = arith.constant 0 : i32
    return %c0_i32, %c0_i32_0 : i32, i32
  }
  func.func @transform_24(%arg0: i32, %arg1: i32) -> (i32, i32) {
    %c0_i32 = arith.constant 0 : i32
    %c0_i32_0 = arith.constant 0 : i32
    %c0_i32_1 = arith.constant 0 : i32
    return %c0_i32, %c0_i32_0 : i32, i32
  }
  func.func @transform_25(%arg0: i32, %arg1: i32) -> (i32, i32, i32) {
    %c0_i32 = arith.constant 0 : i32
    %c0_i32_0 = arith.constant 0 : i32
    %c0_i32_1 = arith.constant 0 : i32
    return %arg0, %c0_i32, %c0_i32_0 : i32, i32, i32
  }
}

</mosaic_0001>

<bundles_post_ra>
// kernel: tpu_custom_call.1
= control target key start
LH: loop header
LB: loop body
LE: loop exit
PB: predicated region body
PF: predicated region fallthrough
CT: control target
= control target key end

     0   :  { %s5669_s0 = inlined_call_operand.hbm [shape: f32[2,8,32], index: 0, kind: input, shape index: {}]   ;;  %s5670_s1 = inlined_call_operand.hbm [shape: f32[2,1,8], index: 1, kind: input, shape index: {}]   ;;  %s5671_s2 = inlined_call_operand.vmem [shape: bf16[8,8,8], index: 2, kind: input, shape index: {}]   ;;  %s5672_s3 = inlined_call_operand.vmem [shape: f32[1,32], index: 3, kind: input, shape index: {}]   ;;  %s5673_s4 = inlined_call_operand.hbm [shape: f32[1,32], index: 4, kind: input, shape index: {}]   ;;  %s5674_s5 = inlined_call_operand.vmem [shape: bf16[2,32,32], index: 5, kind: input, shape index: {}]   ;;  %s5675_s6 = inlined_call_operand.vmem [shape: f32[2,1,32], index: 6, kind: input, shape index: {}]   ;;  %s5676_s7 = inlined_call_operand.vmem [shape: bf16[2,32,32], index: 7, kind: input, shape index: {}]   ;;  %s5677_s8 = inlined_call_operand.vmem [shape: f32[2,1,32], index: 8, kind: input, shape index: {}]   ;;  %s5678_s9 = inlined_call_operand.hbm [shape: bf16[2,32,32], index: 9, kind: input, shape index: {}]   ;;  %s5679_s10 = inlined_call_operand.vmem [shape: f32[2,1,32], index: 10, kind: input, shape index: {}]   ;;  %s5680_s11 = inlined_call_operand.hbm [shape: bf16[2,32,32], index: 11, kind: input, shape index: {}]   ;;  %s5681_s12 = inlined_call_operand.vmem [shape: f32[2,1,32], index: 12, kind: input, shape index: {}]   ;;  %s5682_s13 = inlined_call_operand.vmem [shape: f32[2,1,32], index: 13, kind: input, shape index: {}]   ;;  %s5683_s14 = inlined_call_operand.vmem [shape: f32[2,1,32], index: 14, kind: input, shape index: {}]   ;;  %s5684_s15 = inlined_call_operand.hbm [shape: bf16[2,32,64], index: 15, kind: input, shape index: {}]   ;;  %s5685_s16 = inlined_call_operand.vmem [shape: f32[2,1,64], index: 16, kind: input, shape index: {}]   ;;  %s5686_s17 = inlined_call_operand.vmem [shape: bf16[2,64,32], index: 17, kind: input, shape index: {}]   ;;  %s5687_s18 = inlined_call_operand.vmem [shape: f32[2,1,32], index: 18, kind: input, shape index: {}]   ;;  %s5688_s19 = inlined_call_operand.hbm [shape: f32[2,1,32], index: 19, kind: input, shape index: {}]   ;;  %s5689_s20 = inlined_call_operand.vmem [shape: f32[2,1,32], index: 20, kind: input, shape index: {}]   ;;  %s5690_s21 = inlined_call_operand.hbm [shape: f32[32,32], index: 21, kind: input, shape index: {}]   ;;  %s5691_s22 = inlined_call_operand.vmem [shape: f32[1,32], index: 22, kind: input, shape index: {}]   ;;  %s5692_s23 = inlined_call_operand.hbm [shape: f32[32,128], index: 23, kind: input, shape index: {}]   ;;  %s5693_s24 = inlined_call_operand.vmem [shape: f32[1,128], index: 24, kind: input, shape index: {}]   ;;  %s5694_s25 = inlined_call_operand.hbm [shape: f32[2,1,128], index: 25, kind: output, shape index: {}]  }
   0x1   :  { %5721 = sst [smem:[#allocation44_spill]] %s5669_s0 }
   0x2   :  { %5722 = sst [smem:[#allocation45_spill]] %s5670_s1 }
   0x3   :  { %5723 = sst [smem:[#allocation46_spill]] %s5671_s2 }
   0x4   :  { %5724 = sst [smem:[#allocation47_spill]] %s5672_s3 }
   0x5   :  { %5725 = sst [smem:[#allocation48_spill]] %s5673_s4 }
   0x6   :  { %5726 = sst [smem:[#allocation49_spill]] %s5674_s5 }
   0x7   :  { %5727 = sst [smem:[#allocation50_spill]] %s5675_s6 }
   0x8   :  { %5728 = sst [smem:[#allocation51_spill]] %s5676_s7 }
   0x9   :  { %5729 = sst [smem:[#allocation52_spill]] %s5677_s8 }
   0xa   :  { %5730 = sst [smem:[#allocation53_spill]] %s5678_s9 }
   0xb   :  { %5731 = sst [smem:[#allocation54_spill]] %s5679_s10 }
   0xc   :  { %5732 = sst [smem:[#allocation55_spill]] %s5680_s11 }
   0xd   :  { %5733 = sst [smem:[#allocation56_spill]] %s5681_s12 }
   0xe   :  { %5734 = sst [smem:[#allocation57_spill]] %s5682_s13 }
   0xf   :  { %5735 = sst [smem:[#allocation58_spill]] %s5683_s14 }
  0x10   :  { %5736 = sst [smem:[#allocation59_spill]] %s5684_s15 }
  0x11   :  { %5737 = sst [smem:[#allocation60_spill]] %s5685_s16 }
  0x12   :  { %5738 = sst [smem:[#allocation61_spill]] %s5686_s17 }
  0x13   :  { %5739 = sst [smem:[#allocation62_spill]] %s5687_s18 }
  0x14   :  { %5740 = sst [smem:[#allocation63_spill]] %s5688_s19 }
  0x15   :  { %5741 = sst [smem:[#allocation64_spill]] %s5689_s20 }
  0x16   :  { %5742 = sst [smem:[#allocation65_spill]] %s5690_s21 }
  0x17   :  { %5743 = sst [smem:[#allocation66_spill]] %s5691_s22 }
  0x18   :  { %5744 = sst [smem:[#allocation67_spill]] %s5692_s23 }
  0x19   :  { %5745 = sst [smem:[#allocation68_spill]] %s5693_s24 }
  0x1a   :  { %5746 = sst [smem:[#allocation69_spill]] %s5694_s25 }
  0x1b   :  { %30 = vsyncpa [#allocation5], 0 }
  0x1c   :  { %32 = vsyncpa [#allocation5 + $0x1], 0 }
  0x1d   :  { %33 = vsyncpa [#allocation8], 0 }
  0x1e   :  { %35 = vsyncpa [#allocation8 + $0x1], 0 }
  0x1f   :  { %36 = vsyncpa [#allocation11], 0 }
  0x20   :  { %38 = vsyncpa [#allocation11 + $0x1], 0 }
  0x21   :  { %39 = vsyncpa [#allocation14], 0 }
  0x22   :  { %41 = vsyncpa [#allocation14 + $0x1], 0 }
  0x23   :  { %42 = vsyncpa [#allocation17], 0 }
  0x24   :  { %43 = vsyncpa [#allocation6], 0 }
  0x25   :  { %45 = vsyncpa [#allocation6 + $0x1], 0  ;;  %s4724_s29 = smov 0   ;;  %s4726_s2 = smov 0  }
  0x26   :  { %s4728_s6 = smov 0   ;;  %s4730_s30 = smov 0  }
  0x27   :  { %s4732_s7 = smov 0   ;;  %s4734_s3 = smov 0  }
  0x28   :  { %s4736_s26 = smov 0   ;;  %s4738_s1 = smov 0  }
  0x29   :  { %s4740_s8 = smov 0   ;;  %s4742_s27 = smov 0  }
  0x2a   :  { %s4744_s4 = smov 0  }
  0x2b LB: > { %5747 = sst [smem:[#allocation27_spill]] %s4541_s2  ;;  %s4778_s28 = sadd.s32 4294967295, %s4577_s4   ;;  %s4577_s4 = sphi %s4744_s4, %s51_s4   ;;  %s4573_s27 = sphi %s4742_s27, %s5847_s27   ;;  %s4569_s8 = sphi %s4740_s8, %s5846_s8   ;;  %s4565_s1 = sphi %s4738_s1, %s5845_s1   ;;  %s4561_s26 = sphi %s4736_s26, %s5844_s26   ;;  %s4557_s3 = sphi %s4734_s3, %s5843_s3   ;;  %s4553_s7 = sphi %s4732_s7, %s5842_s7   ;;  %s4549_s30 = sphi %s4730_s30, %s5841_s30   ;;  %s4545_s6 = sphi %s4728_s6, %s5840_s6   ;;  %s4541_s2 = sphi %s4726_s2, %s5839_s2   ;;  %s4537_s29 = sphi %s4724_s29, %s5838_s29  }
  0x2c   : > { %5748 = sst [smem:[#allocation28_spill]] %s4545_s6  ;;  %p302_p0 = scmp.ne.s32.totalorder %s4541_s2, %s4537_s29 }
  0x2d   : > { %5749 = sst [smem:[#allocation29_spill]] %s4549_s30  ;;  %p84_p1 = scmp.eq.s32.totalorder %s4778_s28, 0 }
  0x2e   : > { %5750 = sst [smem:[#allocation30_spill]] %s4553_s7  ;;  %p3740_p2 = scmp.ge.s32.totalorder %s4577_s4, 1 }
  0x2f   : > { %5751 = sst [smem:[#allocation31_spill]] %s4557_s3  ;;  %p709_p3 = scmp.lt.s32.totalorder %s4577_s4, 5 }
  0x30   : > { %5752 = sst [smem:[#allocation32_spill]] %s4561_s26  ;;  %p4786_p4 = por %p302_p0, %p84_p1 }
  0x31   : > { %5753 = sst [smem:[#allocation33_spill]] %s4565_s1  ;;  %p4793_p5 = pnand %p3740_p2, %p709_p3 }
  0x32   : > { %5754 = sst [smem:[#allocation34_spill]] %s4569_s8  ;;  %s4579_s29 = smov [#allocation9]  }
  0x33   : > { %5755 = sst [smem:[#allocation35_spill]] %s4573_s27  ;;  %p3976_p6 = pneg %p4793_p5 }
  0x34   : > { %5756 = sst [smem:[#allocation36_spill]] %s4577_s4  ;;  %s729_s22 = sshll.u32 %s4579_s29, 4  ;;  %s730_s22 = int_to_ptr.vmem [resolvable:$true] %s729_s22 }
  0x35   : > { %s5757_s9 = scalar_select %p4786_p4, 1, 0 }
  0x36   : > { %s5759_s25 = sld [smem:[#allocation48_spill]]  ;;  %p4804_p7 = pnand %p3976_p6, %p84_p1 }
  0x37   : > { %5758 = sst [smem:[#allocation37_spill]] %s5757_s9  ;;  %s4580_s0 = smov [#allocation16]  }
  0x38   : > { %s5760_s24 = scalar_select %p4793_p5, 1, 0 }
  0x39   : > { %s5762_s21 = sld [smem:[#allocation65_spill]]  ;;  %s740_s29 = sshll.u32 %s4580_s0, 4  ;;  %s741_s29 = int_to_ptr.vmem [resolvable:$true] %s740_s29 }
  0x3a   : > { %5761 = sst [smem:[#allocation38_spill]] %s5760_s24  ;;  %s5697_s17 = smov 128  }
  0x3b   : > { %s5698_s20 = smov 8   ;;  %p78_p8 = scmp.eq.s32.totalorder %s4577_s4, 0 }
  0x3c   : > { %s727_s1 = sshll.u32 %s5759_s25, 4  ;;  %p296_p10 = scmp.ne.s32.totalorder %s4545_s6, %s4541_s2  ;;  %s728_s1 = int_to_ptr.hbm [resolvable:$true] %s727_s1 }
  0x3d   : > { %3979 = dma.hbm_to_vmem [thread:$0]  (!%p4804_p7), %s728_s1, 16, %s730_s22, [#allocation8]  }
  0x3e   : > { %s289_s22 = sadd.s32 1, %s4545_s6  ;;  %p5707_p11 = scmp.lt.s32.totalorder %s4577_s4, 4 }
  0x3f   : > { %s738_s25 = sshll.u32 %s5762_s21, 4  ;;  %s60_s21 = sadd.s32 1, %s4569_s8  ;;  %s739_s25 = int_to_ptr.hbm [resolvable:$true] %s738_s25 }
  0x40   : > { %3982 = dma.hbm_to_vmem [thread:$0]  (!%p4804_p7), %s739_s25, 512, %s741_s29, [#allocation17], %s5697_s17, %s5697_s17, %s5698_s20  }
  0x41   : > { %p4817_p9 = scmp.ge.s32.totalorder %s60_s21, 2  ;;  %p4831_p12 = por %p296_p10, %p78_p8 }
  0x42   : > { %s4836_s25 = sand.u32 1, %s4577_s4   ;;  %s5701_s29 = sand.u32 1, %s4545_s6  }
  0x43   : > { %s5849_s21 = smov (%p4817_p9, %s60_s21), 0  ;;  %s4843_s17 = sshll.u32 %s5701_s29, 4 }
  0x44   : > { %5765 = sst [smem:[#allocation39_spill]] %s5849_s21  ;;  %s286_s0 = ssub.s32 %s4569_s8, %s5849_s21 }
  0x45   : > { %p287_p13 = scmp.eq.s32.totalorder %s286_s0, 0  ;;  %s4846_s20 = sshll.u32 %s4569_s8, 4 }
  0x46   : > { %s5768_s12 = sld [smem:[#allocation53_spill]]  ;;  %s842_s21 = scalar_lea.vmem [#allocation10], %s4843_s17 }
  0x47   : > { %s4849_s16 = scalar_select %p287_p13, %s4545_s6, %s289_s22  }
  0x48   : > { %s850_s0 = sshll.u32 %s842_s21, 4  ;;  %p4860_p0 = pnand %p5707_p11, %p4831_p12  ;;  %s851_s0 = int_to_ptr.vmem [resolvable:$true] %s850_s0 }
  0x49   : > { %5767 = sst [smem:[#allocation40_spill]] %s4849_s16  ;;  %s5706_s22 = scalar_lea.sflag [#allocation11], %s4836_s25 }
  0x4a   : > { %s5709_s16 = smov 64   ;;  %s5710_s13 = smov 4  }
  0x4b   : > { %s5770_s15 = sld [smem:[#allocation59_spill]]  ;;  %s910_s21 = scalar_lea.vmem [#allocation13], %s4843_s17 }
  0x4c   : > { %s847_s10 = scalar_lea.hbm %s5768_s12, %s4846_s20  ;;  %s918_s1 = sshll.u32 %s910_s21, 4  ;;  %s919_s1 = int_to_ptr.vmem [resolvable:$true] %s918_s1 }
  0x4d   : > { %s848_s26 = sshll.u32 %s847_s10, 4  ;;  %s5771_s23 = sld [smem:[#allocation67_spill]]  ;;  %s849_s26 = int_to_ptr.hbm [resolvable:$true] %s848_s26 }
  0x4e   : > { %3995 = dma.hbm_to_vmem [thread:$0]  (!%p4860_p0), %s849_s26, 256, %s851_s0, %s5706_s22, %s5709_s16, %s5709_s16, %s5710_s13  }
  0x4f   : > { %s5708_s0 = scalar_lea.sflag [#allocation14], %s4836_s25  ;;  %s4585_s10 = smov [#allocation18]  }
  0x50   : > { %s757_s12 = sshll.u32 %s4585_s10, 4  ;;  %s5773_s21 = smov 128   ;;  %s758_s12 = int_to_ptr.vmem [resolvable:$true] %s757_s12 }
  0x51   : > { %s915_s14 = scalar_lea.hbm %s5770_s15, %s4846_s20  ;;  %s3739_s24 = sadd.s32 4294967294, %s4577_s4  }
  0x52   : > { %s916_s9 = sshll.u32 %s915_s14, 4  ;;  %s5772_s14 = smov 8   ;;  %s917_s9 = int_to_ptr.hbm [resolvable:$true] %s916_s9 }
  0x53   : > { %s755_s26 = sshll.u32 %s5771_s23, 4  ;;  %s63_s2 = sadd.s32 1, %s4573_s27  ;;  %s756_s26 = int_to_ptr.hbm [resolvable:$true] %s755_s26 }
  0x54   : > { %4001 = dma.hbm_to_vmem [thread:$0]  (!%p4860_p0), %s917_s9, 256, %s919_s1, %s5708_s0, %s5709_s16, %s5709_s16, %s5710_s13  }
  0x55   : > { %3985 = dma.hbm_to_vmem [thread:$0]  (!%p4804_p7), %s756_s26, 512, %s758_s12, [#allocation17], %s5773_s21, %s5773_s21, %s5772_s14  }
  0x56   : > { %s5851_s2 = smov (!%p4817_p9, %s63_s2), %s4573_s27  ;;  %s70_s22 = sadd.s32 1, %s4557_s3 }
  0x57   : > { %p77_p2 = scmp.ne.s32.totalorder %s4557_s3, %s4553_s7  ;;  %p65_p3 = scmp.ge.s32.totalorder %s5851_s2, 2 }
  0x58   : > { %p83_p6 = scmp.ne.s32.totalorder %s4553_s7, %s4549_s30  ;;  %p696_p12 = scmp.eq.s32.totalorder %s4778_s28, 3 }
  0x59   : > { %p4905_p10 = por %p78_p8, %p77_p2  ;;  %s5853_s2 = smov (%p65_p3, %s5851_s2), 0 }
  0x5a   : > { %5775 = sst [smem:[#allocation41_spill]] %s5853_s2  ;;  %p4914_p7 = por %p84_p1, %p83_p6 }
  0x5b   : > { %p4918_p9 = por %p696_p12, %p77_p2  ;;  %s67_s1 = ssub.s32 %s4573_s27, %s5853_s2 }
  0x5c   : > { %p702_p8 = scmp.eq.s32.totalorder %s3739_s24, 3  ;;  %p68_p13 = scmp.eq.s32.totalorder %s67_s1, 0 }
  0x5d   : > { %s774_s26 = sand.u32 1, %s4557_s3   ;;  %s3746_s21 = sshll.u32 %s4573_s27, 3 }
  0x5e   : > { %p4925_p11 = por %p702_p8, %p83_p6  ;;  %s3745_s14 = sshll.u32 %s774_s26, 3 }
  0x5f   : > { %s4930_s12 = scalar_select %p68_p13, %s4557_s3, %s70_s22  }
  0x60   : > { %s5778_s10 = scalar_select %p4925_p11, 1, 0 }
  0x61   : > { %5780 = sst [smem:[#allocation43_spill]] %s4930_s12  ;;  %s778_s30 = scalar_lea.vmem [#allocation4], %s3745_s14 }
  0x62   : > { %5779 = sst [smem:[#allocation42_spill]] %s5778_s10  ;;  %s786_s24 = sshll.u32 %s778_s30, 4  ;;  %s787_s24 = int_to_ptr.vmem [resolvable:$true] %s786_s24 }
  0x63   : > { %s5781_s13 = sld [smem:[#allocation44_spill]]  ;;  %p5782_p2 = scmp.lt.s32.totalorder %s4577_s4, 4 }
  0x64   : > { %s5783_s2 = sld [smem:[#allocation45_spill]]  ;;  %s775_s16 = scalar_lea.sflag [#allocation5], %s774_s26 }
  0x65   : > { %p3987_p3 = pnand %p5782_p2, %p4905_p10  ;;  %s794_s30 = scalar_lea.sflag [#allocation8], %s4836_s25 }
  0x66   : > { %s5784_s11 = sld [smem:[#allocation55_spill]]  ;;  %s4970_s0 = sand.u32 (!%p4793_p5), 1, %s4553_s7  }
  0x67   : > { %s5788_s19 = sld [smem:[#allocation63_spill]]  ;;  %s3757_s9 = sshll.u32 (!%p4793_p5), %s4970_s0, 3 }
  0x69   : > { %s782_s15 = scalar_lea.hbm %s5781_s13, %s3746_s21 }
  0x6a   : > { %s784_s23 = sshll.u32 %s782_s15, 4  ;;  %s799_s12 = scalar_lea.hbm %s5783_s2, %s4573_s27  ;;  %s785_s23 = int_to_ptr.hbm [resolvable:$true] %s784_s23 }
  0x6b   : > { %s801_s3 = sshll.u32 %s799_s12, 4  ;;  %s796_s15 = scalar_lea.vmem [#allocation7], %s774_s26  ;;  %s802_s3 = int_to_ptr.hbm [resolvable:$true] %s801_s3 }
  0x6c   : > { %3989 = dma.hbm_to_vmem [thread:$0]  (!%p3987_p3), %s785_s23, 128, %s787_s24, %s775_s16  }
  0x6d   : > { %s803_s13 = sshll.u32 %s796_s15, 4  ;;  %s875_s14 = scalar_lea.hbm %s5784_s11, %s4846_s20  ;;  %s804_s13 = int_to_ptr.vmem [resolvable:$true] %s803_s13 }
  0x6e   : > { %3992 = dma.hbm_to_vmem [thread:$0]  (!%p3987_p3), %s802_s3, 16, %s804_s13, %s794_s30  }
  0x6f   : > { %s870_s2 = scalar_lea.vmem [#allocation12], %s4843_s17  ;;  %s876_s1 = sshll.u32 %s875_s14, 4  ;;  %s877_s1 = int_to_ptr.hbm [resolvable:$true] %s876_s1 }
  0x70   : > { %s878_s21 = sshll.u32 %s870_s2, 4  ;;  %s5785_s12 = smov 4   ;;  %s879_s21 = int_to_ptr.vmem [resolvable:$true] %s878_s21 }
  0x71   : > { %s5786_s23 = smov 64   ;;  %s5787_s26 = scalar_lea.sflag [#allocation11], %s4836_s25 }
  0x72   : > { %3998 = dma.hbm_to_vmem [thread:$0]  (!%p4860_p0), %s877_s1, 256, %s879_s21, %s5787_s26, %s5786_s23, %s5786_s23, %s5785_s12  }
  0x73   : > { %s954_s16 = scalar_lea.hbm %s5788_s19, %s4569_s8  ;;  %s5789_s3 = sand.u32 1, %s4545_s6  }
  0x74   : > { %s951_s15 = scalar_lea.vmem [#allocation15], %s5789_s3  ;;  %s956_s30 = sshll.u32 %s954_s16, 4  ;;  %s957_s30 = int_to_ptr.hbm [resolvable:$true] %s956_s30 }
  0x75   : > { %s958_s13 = sshll.u32 %s951_s15, 4  ;;  %s5790_s17 = scalar_lea.sflag [#allocation14], %s4836_s25  ;;  %s959_s13 = int_to_ptr.vmem [resolvable:$true] %s958_s13 }
  0x76   : > { %4004 = dma.hbm_to_vmem [thread:$0]  (!%p4860_p0), %s957_s30, 16, %s959_s13, %s5790_s17  }
  0x77   : > { %973 = sbr.rel (%p4793_p5) target bundleno = 3945 (0xf69), region = 120  ;;  %s976_s14 = scalar_lea.sflag (!%p4793_p5), [#allocation5], %s4970_s0 }
  0x78   : > { %s4974_s2 = scalar_lea.vmem (!%p4793_p5), [#allocation4], %s3757_s9 }
  0x7c   : > { %4508 = dma.done.wait (%p4914_p7), %s976_s14, 128  }
  0x7d   : > { %4510 = vsyncadd (%p4914_p7), %s976_s14, 4294967168  ;;  %s985_s25 = sand.u32 1, %s4778_s28  }
  0x7e   : > { %s986_s29 = scalar_lea.sflag [#allocation8], %s985_s25 }
  0x7f   : > { %4512 = dma.done.wait (%p4914_p7), %s986_s29, 16  }
  0x80   : > { %4514 = vsyncadd (%p4914_p7), %s986_s29, 4294967280 }
  0x81   : > { %4516 = dma.done.wait (%p84_p1), [#allocation8], 16  }
  0x82   : > { %4518 = vsyncadd (%p84_p1), [#allocation8], 4294967280  ;;  %s5792_s1 = sld [smem:[#allocation27_spill]]  ;;  %s1000_s24 = scalar_lea.sflag [#allocation11], %s985_s25 }
  0x88   : > { %s1001_s23 = sand.u32 1, %s5792_s1  }
  0x89   : > { %s4991_s26 = sshll.u32 %s1001_s23, 4 }
  0x8a   : > { %4520 = dma.done.wait (%p4786_p4), %s1000_s24, 512  }
  0x8b   : > { %4522 = vsyncadd (%p4786_p4), %s1000_s24, 4294966784  ;;  %s1020_s16 = scalar_lea.sflag [#allocation14], %s985_s25 }
  0x8c   : > { %4524 = dma.done.wait (%p4786_p4), %s1020_s16, 272  }
  0x8d   : > { %4526 = vsyncadd (%p4786_p4), %s1020_s16, 4294967024  ;;  %s5004_s15 = scalar_lea.vmem [#allocation15], %s1001_s23 }
  0x8e   : > { %4528 = dma.done.wait (%p84_p1), [#allocation17], 1024  }
  0x8f   : > { %4530 = vsyncadd (%p84_p1), [#allocation17], 4294966272  ;;  %s5794_s13 = sld [smem:[#allocation32_spill]]  ;;  %s1173_s10 = scalar_lea.vmem [#allocation19], %s4970_s0 }
  0x90   : > { %s5796_s1 = sld [smem:[#allocation49_spill]] }
  0x91   : > { %s5797_s16 = sld [smem:[#allocation51_spill]] }
  0x92   : > { %s5800_s9 = sld [smem:[#allocation56_spill]] }
  0x93   : > { %s5803_s21 = sld [smem:[#allocation60_spill]] }
  0x94   : > { %s5804_s8 = sld [smem:[#allocation62_spill]] }
  0x95   : > { %p1174_p5 = scmp.lt.s32.totalorder %s5794_s13, 1  ;;  %s5805_s20 = sld [smem:[#allocation61_spill]] }
  0x96   : > { %p3770_p1 = scmp.ne.s32.totalorder %s5794_s13, 0 }
  0x97   : > { %s5012_s30 = scalar_select %p1174_p5, %s5794_s13, 1 }
  0x98   : > { %s5807_s4 = sld [smem:[#allocation47_spill]] (!%p3770_p1) }
  0x99   : > { %s3933_s17 = sshll.u32 %s5012_s30, 4  ;;  %s1195_s14 = scalar_lea.vmem %s5800_s9, %s5012_s30 }
  0x9a   : > { %s5022_s12 = scalar_lea.vmem %s5796_s1, %s3933_s17  ;;  %s5027_s3 = scalar_lea.vmem %s5797_s16, %s3933_s17 }
  0x9b   : > { %s5802_s17 = sld [smem:[#allocation58_spill]]  ;;  %s1204_s22 = scalar_lea.vmem %s5803_s21, %s5012_s30 }
  0x9c   : > { %s3935_s5 = sshll.u32 %s5012_s30, 5  ;;  %s1212_s27 = scalar_lea.vmem %s5804_s8, %s5012_s30 }
  0x9d   : > { %s5061_s9 = scalar_lea.vmem %s5805_s20, %s3935_s5  ;;  %s5806_s1 = sld [smem:[#allocation64_spill]] }
  0x9f   : > { %1220 = sbr.rel (%p3770_p1) target bundleno = 434 (0x1b2), region = 160 }
  0xa1   : > { %s1201_s24 = scalar_lea.vmem %s5802_s17, %s5012_s30 }
  0xa3   : > { %s1215_s6 = scalar_lea.vmem %s5806_s1, %s5012_s30 }
  0xa4   : > { %v1221_v0 = vld [vmem:[%s4974_s2] sm:$0xff]  ;;  %vm1224_vm0 = vcmask 261120   ;;  %v4586_v2 = vmov 32.0   ;;  %v4120_v23 = vld [vmem:[%s5807_s4] ss:$0 sm:$0xff] }
  0xa5   : > { %v1225_v1 = vsel %vm1224_vm0, %v1221_v0, 0.0  ;;  %4122 = vrcp.f32 %v4586_v2  ;;  %v4121_v25 = vld [vmem:[#allocation9] ss:$0 sm:$0xff] }
  0xa6   : > { %1226 = vadd.xlane.f32.xlu0 %v1225_v1 }
  0xab   : > { %v4123_v3 = vpop.eup %4122 }
  0xac   : > { %v1229_v4 = vmul.f32 32.0, %v4123_v3  ;;  %vm1233_vm1 = vweird.f32 %v4123_v3 }
  0xae   : > { %v1230_v5 = vsub.f32 1.0, %v1229_v4 }
  0xb0   : > { %v1231_v6 = vmul.f32 %v4123_v3, %v1230_v5 }
  0xb2   : > { %v1232_v7 = vadd.f32 %v4123_v3, %v1231_v6 }
  0xb4   : > { %v1234_v8 = vsel %vm1233_vm1, %v4123_v3, %v1232_v7 }
 0x119   : > { %v1227_v9 = vpop.xlane.xlu0 %1226 }
 0x11a   : > { %v1235_v10 = vmul.f32 %v1234_v8, %v1227_v9 }
 0x11c   : > { %v1236_v11 = vsub.f32 %v1221_v0, %v1235_v10 }
 0x11e   : > { %v1237_v12 = vmul.f32 %v1236_v11, %v1236_v11 }
 0x120   : > { %v1238_v13 = vsel %vm1224_vm0, %v1237_v12, 0.0 }
 0x121   : > { %1239 = vadd.xlane.f32.xlu0 %v1238_v13 }
 0x194   : > { %v1240_v14 = vpop.xlane.xlu0 %1239 }
 0x195   : > { %v1241_v15 = vmul.f32 %v1240_v14, %v1234_v8 }
 0x197   : > { %v1242_v16 = vadd.f32 1e-12, %v1241_v15 }
 0x199   : > { %4124 = vrsqrt.f32 %v1242_v16  ;;  %vm1249_vm3 = vweird.f32 %v1242_v16 }
 0x19f   : > { %v4125_v17 = vpop.eup %4124 }
 0x1a0   : > { %v1244_v18 = vmul.f32 %v4125_v17, %v1242_v16  ;;  %vm1250_vm2 = vweird.f32 %v4125_v17 }
 0x1a1   : > { %vm1251_vm4 = vmor %vm1249_vm3, %vm1250_vm2 }
 0x1a2   : > { %v1245_v19 = vmul.f32 %v4125_v17, %v1244_v18 }
 0x1a4   : > { %v1246_v20 = vmul.f32 0.5, %v1245_v19 }
 0x1a6   : > { %v1247_v21 = vsub.f32 1.5, %v1246_v20 }
 0x1a8   : > { %v1248_v22 = vmul.f32 %v4125_v17, %v1247_v21 }
 0x1aa   : > { %v1252_v24 = vsel %vm1251_vm4, %v4125_v17, %v1248_v22 }
 0x1ab   : > { %v1253_v26 = vmul.f32 %v1252_v24, %v1236_v11 }
 0x1ad   : > { %v1257_v27 = vmul.f32 %v4120_v23, %v1253_v26 }
 0x1af   : > { %v1261_v28 = vadd.f32 %v4121_v25, %v1257_v27 }
 0x1b1   : > { %1262 = vst.msk [vmem:[#allocation2] sm:$0xff] %vm1224_vm0, %v1261_v28 }
 0x1b2 PF: > { %v3937_v29 = vld [vmem:[%s5022_s12 + $0x8] sm:$0xff]  ;;  %v3936_v30 = vld [vmem:[%s5022_s12] sm:$0xff]  ;;  %s5808_s2 = scalar_lea.vmem [#allocation10], %s4991_s26  ;;  %vm1294_vm5 = vcmask 261120   ;;  %s5810_s17 = sld [smem:[#allocation46_spill]]  ;;  %vm1409_vm6 = vcmask 64512  }
 0x1b3   : > { %v3939_v32 = vld [vmem:[%s5027_s3 + $0x8] sm:$0xff]  ;;  %1304 = vmatpush.bf16.msra.mxu0 %v3937_v29  ;;  %v3938_v34 = vld [vmem:[%s5027_s3] sm:$0xff]  ;;  %s5809_s13 = smov %s5808_s2  ;;  %s5811_s12 = sld [smem:[#allocation50_spill]]  ;;  %vm1382_vm7 = vcmask 1040384   ;;  %vm1387_vm8 = vcmask 1041409   ;;  %vm1391_vm9 = vcmask 1042434  }
 0x1b4   : > { %v3941_v33 = vld [vmem:[%s5808_s2 + $0x8] sm:$0xff]  ;;  %1337 = vmatpush.bf16.msra.mxu1 %v3939_v32  ;;  %s5813_s21 = sld [smem:[#allocation52_spill]]  ;;  %s4587_s19 = smov 120   ;;  %vm1395_vm10 = vcmask 1043459   ;;  %vm1591_vm11 = vcmask 1044484   ;;  %vm1594_vm12 = vcmask 1045509  }
 0x1b5   : > { %v3940_v35 = vld [vmem:[%s5809_s13] sm:$0xff]  ;;  %1370 = vmatpush.bf16.msra.mxu2 %v3941_v33  ;;  %s5815_s20 = sld [smem:[#allocation54_spill]]  ;;  %s4588_s29 = smov 112   ;;  %vm1597_vm13 = vcmask 1046534   ;;  %vm1600_vm14 = vcmask 1047559   ;;  %vm1666_vm15 = vcmask 1043456  }
 0x1b6   : > { %s5817_s1 = scalar_lea.vmem [#allocation7], %s4970_s0  ;;  %s4589_s11 = smov 104   ;;  %vm2286_vm0 = vcmask 130112   ;;  %vm2706_vm1 = vcmask 195712   ;;  %vm3126_vm2 = vcmask 261312  }
 0x1b7   : > { %1305 = vmatpush.bf16.msra.mxu0 %v3936_v30  ;;  %s4590_s7 = smov 8   ;;  %s4591_s4 = smov 16  }
 0x1b8   : > { %v1263_v31 = vld [vmem:[#allocation2] sm:$0xff]  ;;  %1338 = vmatpush.bf16.msra.mxu1 %v3938_v34  ;;  %v5108_v41 = vld [vmem:[%s5810_s17 + $0x8] sm:$0xf]  ;;  %v5120_v43 = vld [vmem:[%s5810_s17 + $0xc] sm:$0xf]  ;;  %s5818_s2 = smov %s5817_s1  ;;  %s5819_s13 = scalar_lea.vmem [#allocation12], %s4991_s26 }
 0x1b9   : > { %v1264_v36 = vpack.c.bf16 %v1263_v31, %v1263_v31  ;;  %1371 = vmatpush.bf16.msra.mxu2 %v3940_v35  ;;  %v5090_v37 = vld [vmem:[%s5810_s17] sm:$0xf]  ;;  %v5095_v38 = vld [vmem:[%s5810_s17 + $0x4] sm:$0xf]  ;;  %v5114_v42 = vsel %vm1409_vm6, %v5108_v41, 0  ;;  %v5124_v44 = vsel %vm1409_vm6, %v5120_v43, 0  ;;  %s5812_s23 = scalar_lea.vmem %s5811_s12, %s5012_s30 }
 0x1ba   : > { %v5099_v39 = vsel %vm1409_vm6, %v5090_v37, 0  ;;  %v5103_v40 = vsel %vm1409_vm6, %v5095_v38, 0  ;;  %v5129_v45 = vld [vmem:[%s5810_s17 + $0x10] sm:$0xf]  ;;  %v5140_v47 = vld [vmem:[%s5810_s17 + $0x14] sm:$0xf]  ;;  %s5814_s5 = scalar_lea.vmem %s5813_s21, %s5012_s30 }
 0x1bb   : > { %3779 = vmatmul.msk.bf16.vlgmr.msra.gmra.mxu0 %vm1294_vm5, %v1264_v36  ;;  %3788 = vmatmul.msk.bf16.vlgmr.msra.gmra.mxu1 %vm1294_vm5, %v1264_v36  ;;  %v5134_v46 = vsel %vm1409_vm6, %v5129_v45, 0  ;;  %v5145_v48 = vld [vmem:[%s5810_s17 + $0x18] sm:$0xf]  ;;  %v5150_v49 = vld [vmem:[%s5810_s17 + $0x1c] sm:$0xf]  ;;  %v5154_v50 = vsel %vm1409_vm6, %v5140_v47, 0  ;;  %s5816_s25 = scalar_lea.vmem %s5815_s20, %s5012_s30 }
 0x1bc   : > { %3797 = vmatmul.msk.bf16.vlgmr.msra.gmra.mxu2 %vm1294_vm5, %v1264_v36  ;;  %1423 = vmatpush.bf16.xpose.msra.mxu3 %v5099_v39  ;;  %v5158_v51 = vsel %vm1409_vm6, %v5145_v48, 0  ;;  %v5162_v52 = vsel %vm1409_vm6, %v5150_v49, 0  ;;  %v4126_v53 = vld [vmem:[%s5812_s23] ss:$0 sm:$0xff]  ;;  %s4592_s12 = smov 24   ;;  %s5820_s23 = smov %s5819_s13 }
 0x1bd   : > { %1444 = vmatpush.bf16.xpose.msrb.mxu0 %v5103_v40  ;;  %1465 = vmatpush.bf16.xpose.msrb.mxu1 %v5114_v42  ;;  %v4127_v54 = vld [vmem:[%s5814_s5] ss:$0 sm:$0xff]  ;;  %s5824_s8 = sld [smem:[#allocation57_spill]] }
 0x1be   : > { %1486 = vmatpush.bf16.xpose.msrb.mxu2 %v5124_v44  ;;  %v4128_v31 = vld [vmem:[%s5816_s25] ss:$0 sm:$0xff] }
 0x1c3   : > { %s5825_s28 = scalar_lea.vmem %s5824_s8, %s5012_s30 }
 0x1c4   : > { %1507 = vmatpush.bf16.xpose.msrb.mxu3 %v5134_v46 }
 0x1c5   : > { %1528 = vmatpush.bf16.xpose.msra.mxu0 %v5154_v50  ;;  %1549 = vmatpush.bf16.xpose.msra.mxu1 %v5158_v51 }
 0x1c6   : > { %1570 = vmatpush.bf16.xpose.msra.mxu2 %v5162_v52 }
 0x238   : > { %v1307_v55 = vpop.f32.mrf.mxu0  ;;  %v1340_v57 = vpop.f32.mrf.mxu1 }
 0x239   : > { %v1308_v56 = vadd.f32 %v4126_v53, %v1307_v55  ;;  %v1341_v58 = vadd.f32 %v4127_v54, %v1340_v57 }
 0x23b   : > { %v1377_v59 = vpack.c.bf16 %v1308_v56, %v1308_v56  ;;  %v5177_v61 = vpack.c.bf16 %v1341_v58, %v1341_v58 }
 0x23d   : > { %v1381_v60 = vrot.slane %v1377_v59, 3  ;;  %v1606_v5 = vsel %vm1409_vm6, %v5177_v61, 0  ;;  %v2008_v30 = vunpack.c.l.b16 %v1377_v59 }
 0x23f   : > { %v1385_v62 = vsel %vm1382_vm7, %v1377_v59, %v1381_v60  ;;  %v1388_v63 = vsel %vm1387_vm8, %v1377_v59, %v1381_v60  ;;  %v1392_v10 = vsel %vm1391_vm9, %v1377_v59, %v1381_v60  ;;  %v1373_v14 = vpop.f32.mrf.mxu2  ;;  %v1396_v17 = vsel %vm1395_vm10, %v1377_v59, %v1381_v60 }
 0x240   : > { %v1309_v0 = vpop.f32.mrf.mxu0  ;;  %v3798_v1 = vpack.i.b16 %v1385_v62, %v1385_v62  ;;  %v1390_v2 = vrot.slane %v1388_v63, 1  ;;  %v1400_v3 = vunpack.i.h.s16 %v1385_v62  ;;  %v1342_v4 = vpop.f32.mrf.mxu1  ;;  %v1394_v16 = vrot.slane %v1392_v10, 2 }
 0x241   : > { %v1398_v19 = vrot.slane %v1396_v17, 3  ;;  %v5238_v32 = vpack.c.b16 %v2008_v30, %v2008_v30  ;;  %v1374_v33 = vadd.f32 %v4128_v31, %v1373_v14 }
 0x242   : > { %v5183_v6 = vperm.slane %v3798_v1, 0  ;;  %v3801_v7 = vpack.i.b16 %v1390_v2, %v1390_v2  ;;  %v1429_v8 = vpack.i.b16 %v1400_v3, %v1400_v3  ;;  %v1402_v9 = vunpack.i.h.s16 %v1390_v2 }
 0x243   : > { %v1404_v18 = vunpack.i.h.s16 %v1394_v16  ;;  %v3804_v21 = vpack.i.b16 %v1394_v16, %v1394_v16  ;;  %v1406_v23 = vunpack.i.h.s16 %v1398_v19  ;;  %v3807_v24 = vpack.i.b16 %v1398_v19, %v1398_v19 }
 0x244   : > { %1864 = vrot.lane.b32.xlu1 %v5183_v6, %s4587_s19  ;;  %3799 = vmatmul.msk.bf16.vlgmr.msra.gmra.mxu3 %vm1409_vm6, %v5183_v6  ;;  %v5190_v11 = vperm.slane %v3801_v7, 0  ;;  %v5192_v12 = vperm.slane %v1429_v8, 0  ;;  %v1471_v13 = vpack.i.b16 %v1402_v9, %v1402_v9  ;;  %v5243_v34 = vpack.c.bf16 %v1374_v33, %v1374_v33 }
 0x245   : > { %1615 = vmatpush.bf16.xpose.msra.mxu3 %v1606_v5  ;;  %v1513_v22 = vpack.i.b16 %v1404_v18, %v1404_v18  ;;  %v5209_v25 = vperm.slane %v3804_v21, 0  ;;  %v1555_v27 = vpack.i.b16 %v1406_v23, %v1406_v23  ;;  %v5217_v28 = vperm.slane %v3807_v24, 0  ;;  %v5270_v24 = vld [vmem:[%s5817_s1] ss:$0 sm:$0xff] }
 0x246   : > { %1900 = vrot.lane.b32.xlu2 %v5190_v11, %s4587_s19  ;;  %3800 = vmatmul.msk.bf16.vlgmr.msrb.gmra.mxu0 %vm1409_vm6, %v5192_v12  ;;  %v5198_v15 = vperm.slane %v1471_v13, 0 }
 0x247   : > { %3802 = vmatmul.msk.bf16.vlgmr.msrb.gmra.mxu1 %vm1409_vm6, %v5190_v11  ;;  %v1375_v20 = vpop.f32.mrf.mxu2  ;;  %v5211_v26 = vperm.slane %v1513_v22, 0  ;;  %v5223_v29 = vperm.slane %v1555_v27, 0 }
 0x248   : > { %3803 = vmatmul.msk.bf16.vlgmr.msrb.gmra.mxu2 %vm1409_vm6, %v5198_v15 }
 0x24c   : > { %1882 = vrot.lane.b32.xlu1 %v5192_v12, %s4587_s19 }
 0x24e   : > { %1918 = vrot.lane.b32.xlu2 %v5198_v15, %s4587_s19 }
 0x254   : > { %3805 = vmatmul.msk.bf16.vlgmr.msrb.gmra.mxu3 %vm1409_vm6, %v5209_v25  ;;  %1954 = vrot.lane.b32.xlu1 %v5211_v26, %s4587_s19 }
 0x256   : > { %1972 = vrot.lane.b32.xlu2 %v5217_v28, %s4587_s19  ;;  %3806 = vmatmul.msk.bf16.vlgmr.msra.gmra.mxu0 %vm1409_vm6, %v5211_v26 }
 0x257   : > { %3808 = vmatmul.msk.bf16.vlgmr.msra.gmra.mxu1 %vm1409_vm6, %v5217_v28 }
 0x258   : > { %3809 = vmatmul.msk.bf16.vlgmr.msra.gmra.mxu2 %vm1409_vm6, %v5223_v29 }
 0x25c   : > { %2013 = vrot.lane.b32.xlu1 %v5177_v61, %s4587_s19 }
 0x25e   : > { %1990 = vrot.lane.b32.xlu2 %v5223_v29, %s4587_s19 }
 0x264   : > { %3810 = vmatmul.msk.bf16.vlgmr.msra.gmra.mxu3 %vm1409_vm6, %v1377_v59  ;;  %2010 = vrot.lane.b32.xlu1 %v5238_v32, %s4587_s19 }
 0x26c   : > { %2239 = vrot.lane.b32.xlu1 %v5243_v34, %s4587_s19 }
 0x274   : > { %2288 = vrot.lane.b32.xlu1 %v5183_v6, %s4588_s29 }
 0x27c   : > { %2342 = vrot.lane.b32.xlu1 %v5198_v15, %s4588_s29 }
 0x284   : > { %2360 = vrot.lane.b32.xlu1 %v5209_v25, %s4588_s29 }
 0x28c   : > { %2306 = vrot.lane.b32.xlu1 %v5192_v12, %s4588_s29 }
 0x294   : > { %2414 = vrot.lane.b32.xlu1 %v5223_v29, %s4588_s29 }
 0x29c   : > { %2432 = vrot.lane.b32.xlu1 %v5238_v32, %s4588_s29 }
 0x2a4   : > { %2378 = vrot.lane.b32.xlu1 %v5211_v26, %s4588_s29 }
 0x2c3   : > { %v1446_v35 = vpop.f32.mrf.mxu0 }
 0x2c4   : > { %v1467_v36 = vpop.f32.mrf.mxu1  ;;  %v1584_v62 = vrot.slane %v1446_v35, 7 }
 0x2c5   : > { %v1586_v2 = vrot.slane %v1467_v36, 6 }
 0x2c7   : > { %v1425_v53 = vpop.f32.mrf.mxu3 }
 0x2c8   : > { %v1585_v0 = vsel %vm1387_vm8, %v1584_v62, %v1425_v53 }
 0x2c9   : > { %v1587_v7 = vsel %vm1391_vm9, %v1586_v2, %v1585_v0 }
 0x2cb   : > { %v1448_v54 = vpop.f32.mrf.mxu0  ;;  %v1488_v55 = vpop.f32.mrf.mxu2 }
 0x2cc   : > { %v1469_v56 = vpop.f32.mrf.mxu1  ;;  %v1588_v1 = vrot.slane %v1488_v55, 5 }
 0x2cd   : > { %v5279_v56 = vsel %vm1666_vm15, %v5090_v37, 0  ;;  %v5297_v37 = vsel %vm1666_vm15, %v5129_v45, 0 }
 0x2ce   : > { %v1589_v9 = vsel %vm1395_vm10, %v1588_v1, %v1587_v7  ;;  %1676 = vmatpush.bf16.msrb.mxu0 %v5279_v56 }
 0x2cf   : > { %v1427_v57 = vpop.f32.mrf.mxu3 }
 0x2d0   : > { %v5283_v57 = vsel %vm1666_vm15, %v5095_v38, 0  ;;  %v5304_v38 = vsel %vm1666_vm15, %v5140_v47, 0 }
 0x2d1   : > { %1696 = vmatpush.bf16.msrb.mxu1 %v5283_v57 }
 0x2d2   : > { %1756 = vmatpush.bf16.msra.mxu0 %v5297_v37 }
 0x2d3   : > { %v1490_v58 = vpop.f32.mrf.mxu2  ;;  %v1530_v59 = vpop.f32.mrf.mxu0 }
 0x2d4   : > { %v1551_v60 = vpop.f32.mrf.mxu1  ;;  %v1593_v13 = vrot.slane %v1530_v59, 3  ;;  %v5287_v58 = vsel %vm1666_vm15, %v5108_v41, 0  ;;  %v5291_v59 = vsel %vm1666_vm15, %v5120_v43, 0  ;;  %v5309_v41 = vsel %vm1666_vm15, %v5145_v48, 0 }
 0x2d5   : > { %v1596_v17 = vrot.slane %v1551_v60, 2  ;;  %1716 = vmatpush.bf16.msrb.mxu2 %v5287_v58  ;;  %1736 = vmatpush.bf16.msrb.mxu3 %v5291_v59  ;;  %v5313_v43 = vsel %vm1666_vm15, %v5150_v49, 0 }
 0x2d6   : > { %1776 = vmatpush.bf16.msra.mxu1 %v5304_v38 }
 0x2d7   : > { %v1509_v63 = vpop.f32.mrf.mxu3 }
 0x2d8   : > { %v1590_v3 = vrot.slane %v1509_v63, 4 }
 0x2d9   : > { %1796 = vmatpush.bf16.msra.mxu2 %v5309_v41  ;;  %1816 = vmatpush.bf16.msra.mxu3 %v5313_v43 }
 0x2da   : > { %v1592_v10 = vsel %vm1591_vm11, %v1590_v3, %v1589_v9 }
 0x2db   : > { %v1532_v4 = vpop.f32.mrf.mxu0  ;;  %v1572_v5 = vpop.f32.mrf.mxu2  ;;  %v1595_v16 = vsel %vm1594_vm12, %v1593_v13, %v1592_v10 }
 0x2dc   : > { %v1553_v8 = vpop.f32.mrf.mxu1  ;;  %v1599_v18 = vrot.slane %v1572_v5, 1  ;;  %v1598_v20 = vsel %vm1597_vm13, %v1596_v17, %v1595_v16 }
 0x2dd   : > { %v1848_v8 = vsel %vm1666_vm15, %v5243_v34, 0 }
 0x2de   : > { %v1601_v21 = vsel %vm1600_vm14, %v1599_v18, %v1598_v20 }
 0x2df   : > { %v1511_v14 = vpop.f32.mrf.mxu3 }
 0x2e0   : > { %v1865_v14 = vpop.permute.xlu1 %1864 }
 0x2e3   : > { %v1574_v19 = vpop.f32.mrf.mxu2 }
 0x2e7   : > { %v1617_v22 = vpop.f32.mrf.mxu3 }
 0x2e8   : > { %v1618_v23 = vadd.f32 %v1617_v22, %v1601_v21 }
 0x2ea   : > { %v1621_v27 = vmul.f32 0.35355338, %v1618_v23 }
 0x2ec   : > { %v1625_v30 = vadd.f32 %v5270_v24, %v1621_v27  ;;  %v1883_v27 = vpop.permute.xlu1 %1882 }
 0x2ee   : > { %v1626_v31 = vsel %vm1409_vm6, %v1625_v30, -inf }
 0x2ef   : > { %v1619_v33 = vpop.f32.mrf.mxu3  ;;  %1627 = vmax.xlane.f32.xlu0 %v1626_v31 }
 0x362   : > { %v1628_v35 = vpop.xlane.xlu0 %1627 }
 0x363   : > { %v1629_v36 = vsub.f32 %v1625_v30, %v1628_v35 }
 0x365   : > { %v1630_v53 = vmul.f32 1.442695, %v1629_v36 }
 0x367   : > { %4137 = vpow2.f32 %v1630_v53 }
 0x36d   : > { %v4138_v54 = vpop.eup %4137 }
 0x36e   : > { %v1632_v55 = vsel %vm1409_vm6, %v4138_v54, 0.0 }
 0x36f   : > { %1633 = vadd.xlane.f32.xlu0 %v1632_v55  ;;  %v1955_v55 = vpop.permute.xlu1 %1954 }
 0x383   : > { %1936 = vrot.lane.b32.xlu0 %v5209_v25, %s4587_s19 }
 0x3e2   : > { %v1634_v45 = vpop.xlane.xlu0 %1633 }
 0x3e3   : > { %4139 = vrcp.f32 %v1634_v45  ;;  %v1901_v45 = vpop.permute.xlu2 %1900 }
 0x3e9   : > { %v4140_v60 = vpop.eup %4139 }
 0x3ea   : > { %v1636_v62 = vmul.f32 %v4140_v60, %v4138_v54  ;;  %v2014_v60 = vpop.permute.xlu1 %2013 }
 0x3ec   : > { %v1637_v47 = vpack.c.bf16 %v1636_v62, %v1636_v62  ;;  %v2042_v62 = vsel %vm1409_vm6, %v2014_v60, 0 }
 0x3ee   : > { %v1639_v63 = vrot.slane %v1637_v47, 3 }
 0x3f0   : > { %v1642_v0 = vsel %vm1382_vm7, %v1637_v47, %v1639_v63  ;;  %v1644_v1 = vsel %vm1387_vm8, %v1637_v47, %v1639_v63  ;;  %v1647_v16 = vsel %vm1391_vm9, %v1637_v47, %v1639_v63  ;;  %v1650_v18 = vsel %vm1395_vm10, %v1637_v47, %v1639_v63  ;;  %v1919_v63 = vpop.permute.xlu2 %1918 }
 0x3f1   : > { %v3811_v48 = vpack.i.b16 %v1642_v0, %v1642_v0  ;;  %v1654_v2 = vunpack.i.h.s16 %v1642_v0  ;;  %v1646_v3 = vrot.slane %v1644_v1, 1  ;;  %v1649_v19 = vrot.slane %v1647_v16, 2 }
 0x3f2   : > { %v1652_v20 = vrot.slane %v1650_v18, 3 }
 0x3f3   : > { %v1662_v4 = vperm.slane %v3811_v48, 0  ;;  %v1682_v49 = vpack.i.b16 %v1654_v2, %v1654_v2  ;;  %v3814_v5 = vpack.i.b16 %v1646_v3, %v1646_v3  ;;  %v1656_v7 = vunpack.i.h.s16 %v1646_v3  ;;  %v2011_v48 = vpop.permute.xlu1 %2010 }
 0x3f4   : > { %v1658_v21 = vunpack.i.h.s16 %v1649_v19  ;;  %v3817_v22 = vpack.i.b16 %v1649_v19, %v1649_v19  ;;  %v1660_v23 = vunpack.i.h.s16 %v1652_v20  ;;  %v3820_v31 = vpack.i.b16 %v1652_v20, %v1652_v20 }
 0x3f5   : > { %3812 = vmatmul.msk.bf16.vlgmr.msrb.gmra.mxu0 %vm1409_vm6, %v1662_v4  ;;  %v1683_v9 = vperm.slane %v1682_v49, 0  ;;  %v1703_v10 = vperm.slane %v3814_v5, 0  ;;  %v1722_v13 = vpack.i.b16 %v1656_v7, %v1656_v7  ;;  %v1937_v0 = vpop.permute.xlu0 %1936 }
 0x3f6   : > { %1857 = vmatpush.bf16.msrb.mxu0 %v1848_v8  ;;  %v1762_v30 = vpack.i.b16 %v1658_v21, %v1658_v21  ;;  %v1743_v33 = vperm.slane %v3817_v22, 0  ;;  %v1802_v35 = vpack.i.b16 %v1660_v23, %v1660_v23  ;;  %v1783_v53 = vperm.slane %v3820_v31, 0 }
 0x3f7   : > { %3813 = vmatmul.msk.bf16.vlgmr.msrb.gmra.mxu1 %vm1409_vm6, %v1683_v9  ;;  %3815 = vmatmul.msk.bf16.vlgmr.msrb.gmra.mxu2 %vm1409_vm6, %v1703_v10  ;;  %v1723_v17 = vperm.slane %v1722_v13, 0 }
 0x3f8   : > { %1876 = vmatpush.bf16.xpose.msrb.mxu1 %v5099_v39  ;;  %1894 = vmatpush.bf16.xpose.msrb.mxu2 %v5103_v40  ;;  %v1763_v36 = vperm.slane %v1762_v30, 0  ;;  %v1803_v54 = vperm.slane %v1802_v35, 0 }
 0x3f9   : > { %3816 = vmatmul.msk.bf16.vlgmr.msrb.gmra.mxu3 %vm1409_vm6, %v1723_v17 }
 0x3fa   : > { %1912 = vmatpush.bf16.xpose.msrb.mxu3 %v5114_v42 }
 0x405   : > { %3818 = vmatmul.msk.bf16.vlgmr.msra.gmra.mxu0 %vm1409_vm6, %v1743_v33 }
 0x406   : > { %1930 = vmatpush.bf16.xpose.msra.mxu0 %v5124_v44 }
 0x407   : > { %3819 = vmatmul.msk.bf16.vlgmr.msra.gmra.mxu1 %vm1409_vm6, %v1763_v36  ;;  %3821 = vmatmul.msk.bf16.vlgmr.msra.gmra.mxu2 %vm1409_vm6, %v1783_v53 }
 0x408   : > { %1948 = vmatpush.bf16.xpose.msra.mxu1 %v5134_v46  ;;  %1966 = vmatpush.bf16.xpose.msra.mxu2 %v5154_v50 }
 0x409   : > { %3822 = vmatmul.msk.bf16.vlgmr.msra.gmra.mxu3 %vm1409_vm6, %v1803_v54 }
 0x40a   : > { %1984 = vmatpush.bf16.xpose.msra.mxu3 %v5158_v51 }
 0x415   : > { %3823 = vmatmul.msk.bf16.vlgmr.msrb.gmra.mxu0 %vm1409_vm6, %v1637_v47  ;;  %v1973_v47 = vpop.permute.xlu2 %1972 }
 0x416   : > { %2002 = vmatpush.bf16.xpose.msrb.mxu0 %v5162_v52 }
 0x417   : > { %3824 = vmatmul.msk.bf16.vlgmr.msrb.gmra.mxu1 %vm1409_vm6, %v1865_v14  ;;  %3825 = vmatmul.msk.bf16.vlgmr.msrb.gmra.mxu2 %vm1409_vm6, %v1883_v27 }
 0x418   : > { %2051 = vmatpush.bf16.xpose.msrb.mxu1 %v2042_v62  ;;  %2106 = vmatpush.bf16.msrb.mxu2 %v5279_v56 }
 0x419   : > { %3826 = vmatmul.msk.bf16.vlgmr.msrb.gmra.mxu3 %vm1409_vm6, %v1901_v45 }
 0x41a   : > { %2124 = vmatpush.bf16.msrb.mxu3 %v5283_v57 }
 0x41d   : > { %v1991_v1 = vpop.permute.xlu2 %1990 }
 0x425   : > { %3827 = vmatmul.msk.bf16.vlgmr.msra.gmra.mxu0 %vm1409_vm6, %v1919_v63 }
 0x426   : > { %2142 = vmatpush.bf16.msra.mxu0 %v5287_v58 }
 0x427   : > { %3828 = vmatmul.msk.bf16.vlgmr.msra.gmra.mxu1 %vm1409_vm6, %v1937_v0  ;;  %3829 = vmatmul.msk.bf16.vlgmr.msra.gmra.mxu2 %vm1409_vm6, %v1955_v55 }
 0x428   : > { %2178 = vmatpush.bf16.msra.mxu2 %v5297_v37  ;;  %2160 = vmatpush.bf16.msra.mxu1 %v5291_v59 }
 0x429   : > { %3830 = vmatmul.msk.bf16.vlgmr.msra.gmra.mxu3 %vm1409_vm6, %v1973_v47 }
 0x42a   : > { %2196 = vmatpush.bf16.msra.mxu3 %v5304_v38 }
 0x435   : > { %3831 = vmatmul.msk.bf16.vlgmr.msrb.gmra.mxu0 %vm1409_vm6, %v1991_v1 }
 0x436   : > { %2214 = vmatpush.bf16.msrb.mxu0 %v5309_v41 }
 0x437   : > { %3832 = vmatmul.msk.bf16.vlgmr.msrb.gmra.mxu1 %vm1409_vm6, %v2011_v48 }
 0x438   : > { %2232 = vmatpush.bf16.msrb.mxu1 %v5313_v43 }
 0x472   : > { %v1678_v2 = vpop.f32.mrf.mxu0 }
 0x474   : > { %v1698_v3 = vpop.f32.mrf.mxu1 }
 0x475   : > { %v1830_v8 = vrot.slane %v1698_v3, 7 }
 0x477   : > { %v1831_v17 = vsel %vm1387_vm8, %v1830_v8, %v1678_v2 }
 0x47a   : > { %v1680_v4 = vpop.f32.mrf.mxu0  ;;  %v1718_v49 = vpop.f32.mrf.mxu2 }
 0x47b   : > { %v1832_v13 = vrot.slane %v1718_v49, 6 }
 0x47c   : > { %v1700_v5 = vpop.f32.mrf.mxu1  ;;  %v1738_v7 = vpop.f32.mrf.mxu3 }
 0x47d   : > { %v1834_v18 = vrot.slane %v1738_v7, 5  ;;  %v1833_v19 = vsel %vm1391_vm9, %v1832_v13, %v1831_v17 }
 0x47f   : > { %v1835_v21 = vsel %vm1395_vm10, %v1834_v18, %v1833_v19 }
 0x482   : > { %v1720_v9 = vpop.f32.mrf.mxu2  ;;  %v1758_v10 = vpop.f32.mrf.mxu0 }
 0x483   : > { %v1836_v20 = vrot.slane %v1758_v10, 4 }
 0x484   : > { %v1740_v14 = vpop.f32.mrf.mxu3  ;;  %v1778_v16 = vpop.f32.mrf.mxu1 }
 0x485   : > { %v1838_v22 = vrot.slane %v1778_v16, 3  ;;  %v1837_v30 = vsel %vm1591_vm11, %v1836_v20, %v1835_v21 }
 0x487   : > { %v1839_v36 = vsel %vm1594_vm12, %v1838_v22, %v1837_v30 }
 0x48a   : > { %v1760_v23 = vpop.f32.mrf.mxu0  ;;  %v1798_v27 = vpop.f32.mrf.mxu2 }
 0x48b   : > { %v1840_v31 = vrot.slane %v1798_v27, 2 }
 0x48c   : > { %v1780_v33 = vpop.f32.mrf.mxu1  ;;  %v1818_v35 = vpop.f32.mrf.mxu3 }
 0x48d   : > { %v1842_v53 = vrot.slane %v1818_v35, 1  ;;  %v1841_v54 = vsel %vm1597_vm13, %v1840_v31, %v1839_v36 }
 0x48f   : > { %v1843_v45 = vsel %vm1600_vm14, %v1842_v53, %v1841_v54 }
 0x492   : > { %v1800_v55 = vpop.f32.mrf.mxu2  ;;  %v1859_v60 = vpop.f32.mrf.mxu0 }
 0x493   : > { %v1860_v62 = vadd.f32 %v1859_v60, %v1843_v45 }
 0x494   : > { %v1820_v63 = vpop.f32.mrf.mxu3  ;;  %v1878_v0 = vpop.f32.mrf.mxu1 }
 0x495   : > { %1863 = vst.msk [vmem:[#allocation3] sm:$0xff] %vm1409_vm6, %v1860_v62 }
 0x49a   : > { %v1861_v47 = vpop.f32.mrf.mxu0  ;;  %v1896_v1 = vpop.f32.mrf.mxu2 }
 0x49b   : > { %v2023_v7 = vrot.slane %v1896_v1, 7 }
 0x49c   : > { %v1880_v48 = vpop.f32.mrf.mxu1  ;;  %v1914_v2 = vpop.f32.mrf.mxu3 }
 0x49d   : > { %v2025_v8 = vrot.slane %v1914_v2, 6  ;;  %v2024_v9 = vsel %vm1387_vm8, %v2023_v7, %v1878_v0 }
 0x49f   : > { %v2026_v16 = vsel %vm1391_vm9, %v2025_v8, %v2024_v9 }
 0x4a2   : > { %v1898_v3 = vpop.f32.mrf.mxu2  ;;  %v1932_v4 = vpop.f32.mrf.mxu0 }
 0x4a3   : > { %v2027_v10 = vrot.slane %v1932_v4, 5 }
 0x4a4   : > { %v1916_v49 = vpop.f32.mrf.mxu3  ;;  %v1950_v5 = vpop.f32.mrf.mxu1 }
 0x4a5   : > { %v2029_v17 = vrot.slane %v1950_v5, 4  ;;  %v2028_v20 = vsel %vm1395_vm10, %v2027_v10, %v2026_v16 }
 0x4a7   : > { %v2030_v22 = vsel %vm1591_vm11, %v2029_v17, %v2028_v20 }
 0x4aa   : > { %v1934_v13 = vpop.f32.mrf.mxu0  ;;  %v1968_v14 = vpop.f32.mrf.mxu2 }
 0x4ab   : > { %v2031_v21 = vrot.slane %v1968_v14, 3 }
 0x4ac   : > { %v1952_v18 = vpop.f32.mrf.mxu1  ;;  %v1986_v19 = vpop.f32.mrf.mxu3 }
 0x4ad   : > { %v2033_v23 = vrot.slane %v1986_v19, 2  ;;  %v2032_v27 = vsel %vm1594_vm12, %v2031_v21, %v2030_v22 }
 0x4af   : > { %v2034_v36 = vsel %vm1597_vm13, %v2033_v23, %v2032_v27 }
 0x4b2   : > { %v1970_v30 = vpop.f32.mrf.mxu2  ;;  %v2004_v31 = vpop.f32.mrf.mxu0 }
 0x4b3   : > { %v2035_v33 = vrot.slane %v2004_v31, 1 }
 0x4b4   : > { %v1988_v35 = vpop.f32.mrf.mxu3  ;;  %v2053_v53 = vpop.f32.mrf.mxu1 }
 0x4b5   : > { %v2036_v54 = vsel %vm1600_vm14, %v2035_v33, %v2034_v36 }
 0x4b6   : > { %v2054_v55 = vadd.f32 %v2053_v53, %v2036_v54 }
 0x4b8   : > { %v2057_v45 = vmul.f32 0.35355338, %v2054_v55 }
 0x4ba   : > { %v2006_v60 = vpop.f32.mrf.mxu0  ;;  %v2058_v62 = vadd.f32 %v5270_v24, %v2057_v45 }
 0x4bc   : > { %v2055_v63 = vpop.f32.mrf.mxu1  ;;  %v2059_v0 = vsel %vm1409_vm6, %v2058_v62, -inf }
 0x4bd   : > { %2060 = vmax.xlane.f32.xlu2 %v2059_v0 }
 0x4d5   : > { %2324 = vrot.lane.b32.xlu2 %v5190_v11, %s4588_s29 }
 0x4dd   : > { %2396 = vrot.lane.b32.xlu2 %v5217_v28, %s4588_s29 }
 0x4e5   : > { %2659 = vrot.lane.b32.xlu2 %v5243_v34, %s4588_s29 }
 0x4ed   : > { %2708 = vrot.lane.b32.xlu2 %v5183_v6, %s4589_s11 }
 0x4f5   : > { %2726 = vrot.lane.b32.xlu2 %v5192_v12, %s4589_s11 }
 0x4fd   : > { %2744 = vrot.lane.b32.xlu2 %v5190_v11, %s4589_s11  ;;  %v2240_v11 = vpop.permute.xlu1 %2239 }
 0x4fe   : > { %v2267_v17 = vsel %vm1666_vm15, %v2240_v11, 0 }
 0x505   : > { %2762 = vrot.lane.b32.xlu2 %v5198_v15, %s4589_s11  ;;  %v2289_v2 = vpop.permute.xlu1 %2288 }
 0x50d   : > { %2798 = vrot.lane.b32.xlu2 %v5211_v26, %s4589_s11 }
 0x515   : > { %2854 = vrot.lane.b32.xlu2 %v5177_v61, %s4589_s11 }
 0x51d   : > { %2852 = vrot.lane.b32.xlu2 %v5238_v32, %s4589_s11 }
 0x530   : > { %v2061_v47 = vpop.xlane.xlu2 %2060 }
 0x531   : > { %v2062_v6 = vsub.f32 %v2058_v62, %v2061_v47 }
 0x533   : > { %v2063_v1 = vmul.f32 1.442695, %v2062_v6 }
 0x535   : > { %4141 = vpow2.f32 %v2063_v1 }
 0x53b   : > { %v4142_v12 = vpop.eup %4141 }
 0x53c   : > { %v2065_v48 = vsel %vm1409_vm6, %v4142_v12, 0.0 }
 0x53d   : > { %2066 = vadd.xlane.f32.xlu0 %v2065_v48 }
 0x551   : > { %2434 = vrot.lane.b32.xlu0 %v5177_v61, %s4588_s29  ;;  %v2343_v61 = vpop.permute.xlu1 %2342 }
 0x559   : > { %v2361_v33 = vpop.permute.xlu1 %2360 }
 0x561   : > { %v2307_v0 = vpop.permute.xlu1 %2306 }
 0x569   : > { %v2415_v47 = vpop.permute.xlu1 %2414 }
 0x571   : > { %v2433_v48 = vpop.permute.xlu1 %2432 }
 0x579   : > { %v2379_v11 = vpop.permute.xlu1 %2378 }
 0x5b0   : > { %v2067_v15 = vpop.xlane.xlu0 %2066 }
 0x5b1   : > { %4143 = vrcp.f32 %v2067_v15 }
 0x5b7   : > { %v4144_v26 = vpop.eup %4143 }
 0x5b8   : > { %v2069_v3 = vmul.f32 %v4144_v26, %v4142_v12  ;;  %v2325_v12 = vpop.permute.xlu2 %2324 }
 0x5ba   : > { %v2070_v4 = vpack.c.bf16 %v2069_v3, %v2069_v3 }
 0x5bc   : > { %v2072_v49 = vrot.slane %v2070_v4, 3 }
 0x5be   : > { %v2075_v32 = vsel %vm1382_vm7, %v2070_v4, %v2072_v49  ;;  %v2077_v5 = vsel %vm1387_vm8, %v2070_v4, %v2072_v49  ;;  %v2080_v21 = vsel %vm1391_vm9, %v2070_v4, %v2072_v49  ;;  %v2083_v23 = vsel %vm1395_vm10, %v2070_v4, %v2072_v49 }
 0x5bf   : > { %v3833_v7 = vpack.i.b16 %v2075_v32, %v2075_v32  ;;  %v2087_v8 = vunpack.i.h.s16 %v2075_v32  ;;  %v2079_v9 = vrot.slane %v2077_v5, 1  ;;  %v2082_v27 = vrot.slane %v2080_v21, 2 }
 0x5c0   : > { %v2085_v30 = vrot.slane %v2083_v23, 3  ;;  %v2397_v15 = vpop.permute.xlu2 %2396 }
 0x5c1   : > { %v2095_v10 = vperm.slane %v3833_v7, 0  ;;  %v2112_v13 = vpack.i.b16 %v2087_v8, %v2087_v8  ;;  %v3836_v14 = vpack.i.b16 %v2079_v9, %v2079_v9  ;;  %v2089_v16 = vunpack.i.h.s16 %v2079_v9 }
 0x5c2   : > { %v2091_v31 = vunpack.i.h.s16 %v2082_v27  ;;  %v3839_v35 = vpack.i.b16 %v2082_v27, %v2082_v27  ;;  %v2093_v36 = vunpack.i.h.s16 %v2085_v30  ;;  %v3842_v54 = vpack.i.b16 %v2085_v30, %v2085_v30 }
 0x5c3   : > { %3834 = vmatmul.msk.bf16.vlgmr.msrb.gmra.mxu2 %vm1409_vm6, %v2095_v10  ;;  %v2113_v18 = vperm.slane %v2112_v13, 0  ;;  %v2131_v19 = vperm.slane %v3836_v14, 0  ;;  %v2148_v20 = vpack.i.b16 %v2089_v16, %v2089_v16  ;;  %v2435_v6 = vpop.permute.xlu0 %2434 }
 0x5c4   : > { %2276 = vmatpush.bf16.msrb.mxu2 %v2267_v17  ;;  %v2184_v53 = vpack.i.b16 %v2091_v31, %v2091_v31  ;;  %v2167_v55 = vperm.slane %v3839_v35, 0  ;;  %v2220_v45 = vpack.i.b16 %v2093_v36, %v2093_v36  ;;  %v2203_v62 = vperm.slane %v3842_v54, 0 }
 0x5c5   : > { %3835 = vmatmul.msk.bf16.vlgmr.msrb.gmra.mxu3 %vm1409_vm6, %v2113_v18  ;;  %3837 = vmatmul.msk.bf16.vlgmr.msra.gmra.mxu0 %vm1409_vm6, %v2131_v19  ;;  %v2149_v22 = vperm.slane %v2148_v20, 0  ;;  %v2463_v1 = vsel %vm1409_vm6, %v2435_v6, 0 }
 0x5c6   : > { %2300 = vmatpush.bf16.xpose.msrb.mxu3 %v5099_v39  ;;  %2318 = vmatpush.bf16.xpose.msra.mxu0 %v5103_v40  ;;  %v2185_v60 = vperm.slane %v2184_v53, 0  ;;  %v2221_v63 = vperm.slane %v2220_v45, 0 }
 0x5c7   : > { %3838 = vmatmul.msk.bf16.vlgmr.msra.gmra.mxu1 %vm1409_vm6, %v2149_v22 }
 0x5c8   : > { %2336 = vmatpush.bf16.xpose.msra.mxu1 %v5114_v42 }
 0x5d3   : > { %3840 = vmatmul.msk.bf16.vlgmr.msra.gmra.mxu2 %vm1409_vm6, %v2167_v55 }
 0x5d4   : > { %2354 = vmatpush.bf16.xpose.msra.mxu2 %v5124_v44 }
 0x5d5   : > { %3841 = vmatmul.msk.bf16.vlgmr.msra.gmra.mxu3 %vm1409_vm6, %v2185_v60  ;;  %3843 = vmatmul.msk.bf16.vlgmr.msrb.gmra.mxu0 %vm1409_vm6, %v2203_v62 }
 0x5d6   : > { %2372 = vmatpush.bf16.xpose.msra.mxu3 %v5134_v46  ;;  %2390 = vmatpush.bf16.xpose.msrb.mxu0 %v5154_v50 }
 0x5d7   : > { %3844 = vmatmul.msk.bf16.vlgmr.msrb.gmra.mxu1 %vm1409_vm6, %v2221_v63 }
 0x5d8   : > { %2408 = vmatpush.bf16.xpose.msrb.mxu1 %v5158_v51 }
 0x5e3   : > { %3845 = vmatmul.msk.bf16.vlgmr.msrb.gmra.mxu2 %vm1409_vm6, %v2070_v4 }
 0x5e4   : > { %2426 = vmatpush.bf16.xpose.msrb.mxu2 %v5162_v52 }
 0x5e5   : > { %3846 = vmatmul.msk.bf16.vlgmr.msrb.gmra.mxu3 %vm1409_vm6, %v2289_v2  ;;  %3847 = vmatmul.msk.bf16.vlgmr.msra.gmra.mxu0 %vm1409_vm6, %v2307_v0 }
 0x5e6   : > { %2472 = vmatpush.bf16.xpose.msrb.mxu3 %v2463_v1  ;;  %2527 = vmatpush.bf16.msra.mxu0 %v5279_v56 }
 0x5e7   : > { %3848 = vmatmul.msk.bf16.vlgmr.msra.gmra.mxu1 %vm1409_vm6, %v2325_v12 }
 0x5e8   : > { %2545 = vmatpush.bf16.msra.mxu1 %v5283_v57 }
 0x5f3   : > { %3849 = vmatmul.msk.bf16.vlgmr.msra.gmra.mxu2 %vm1409_vm6, %v2343_v61 }
 0x5f4   : > { %2563 = vmatpush.bf16.msra.mxu2 %v5287_v58 }
 0x5f5   : > { %3850 = vmatmul.msk.bf16.vlgmr.msra.gmra.mxu3 %vm1409_vm6, %v2361_v33  ;;  %3851 = vmatmul.msk.bf16.vlgmr.msrb.gmra.mxu0 %vm1409_vm6, %v2379_v11 }
 0x5f6   : > { %2581 = vmatpush.bf16.msra.mxu3 %v5291_v59  ;;  %2599 = vmatpush.bf16.msrb.mxu0 %v5297_v37 }
 0x5f7   : > { %3852 = vmatmul.msk.bf16.vlgmr.msrb.gmra.mxu1 %vm1409_vm6, %v2397_v15 }
 0x5f8   : > { %2617 = vmatpush.bf16.msrb.mxu1 %v5304_v38 }
 0x603   : > { %3853 = vmatmul.msk.bf16.vlgmr.msrb.gmra.mxu2 %vm1409_vm6, %v2415_v47 }
 0x604   : > { %2635 = vmatpush.bf16.msrb.mxu2 %v5309_v41 }
 0x605   : > { %3854 = vmatmul.msk.bf16.vlgmr.msrb.gmra.mxu3 %vm1409_vm6, %v2433_v48 }
 0x606   : > { %2653 = vmatpush.bf16.msrb.mxu3 %v5313_v43 }
 0x642   : > { %v2144_v26 = vpop.f32.mrf.mxu0 }
 0x643   : > { %v2251_v32 = vrot.slane %v2144_v26, 6 }
 0x644   : > { %v2162_v2 = vpop.f32.mrf.mxu1 }
 0x645   : > { %v2253_v7 = vrot.slane %v2162_v2, 5 }
 0x646   : > { %v2108_v3 = vpop.f32.mrf.mxu2 }
 0x648   : > { %v2126_v4 = vpop.f32.mrf.mxu3 }
 0x649   : > { %v2249_v49 = vrot.slane %v2126_v4, 7 }
 0x64a   : > { %v2146_v5 = vpop.f32.mrf.mxu0 }
 0x64b   : > { %v2250_v8 = vsel %vm1387_vm8, %v2249_v49, %v2108_v3 }
 0x64c   : > { %v2252_v9 = vsel %vm1391_vm9, %v2251_v32, %v2250_v8  ;;  %v2164_v10 = vpop.f32.mrf.mxu1 }
 0x64d   : > { %v2254_v13 = vsel %vm1395_vm10, %v2253_v7, %v2252_v9 }
 0x64e   : > { %v2110_v14 = vpop.f32.mrf.mxu2 }
 0x650   : > { %v2128_v16 = vpop.f32.mrf.mxu3 }
 0x652   : > { %v2216_v61 = vpop.f32.mrf.mxu0 }
 0x653   : > { %v2259_v23 = vrot.slane %v2216_v61, 2 }
 0x654   : > { %v2234_v17 = vpop.f32.mrf.mxu1 }
 0x655   : > { %v2261_v30 = vrot.slane %v2234_v17, 1 }
 0x656   : > { %v2180_v18 = vpop.f32.mrf.mxu2 }
 0x657   : > { %v2255_v19 = vrot.slane %v2180_v18, 4 }
 0x658   : > { %v2198_v20 = vpop.f32.mrf.mxu3 }
 0x659   : > { %v2256_v21 = vsel %vm1591_vm11, %v2255_v19, %v2254_v13  ;;  %v2257_v22 = vrot.slane %v2198_v20, 3 }
 0x65a   : > { %v2218_v27 = vpop.f32.mrf.mxu0 }
 0x65b   : > { %v2258_v31 = vsel %vm1594_vm12, %v2257_v22, %v2256_v21 }
 0x65c   : > { %v2236_v33 = vpop.f32.mrf.mxu1  ;;  %v2260_v35 = vsel %vm1597_vm13, %v2259_v23, %v2258_v31 }
 0x65d   : > { %v2262_v36 = vsel %vm1600_vm14, %v2261_v30, %v2260_v35 }
 0x65e   : > { %v2182_v53 = vpop.f32.mrf.mxu2 }
 0x660   : > { %v2200_v54 = vpop.f32.mrf.mxu3 }
 0x662   : > { %v2320_v55 = vpop.f32.mrf.mxu0 }
 0x663   : > { %v2444_v26 = vrot.slane %v2320_v55, 7 }
 0x664   : > { %v2338_v45 = vpop.f32.mrf.mxu1 }
 0x665   : > { %v2446_v49 = vrot.slane %v2338_v45, 6 }
 0x666   : > { %v2278_v60 = vpop.f32.mrf.mxu2 }
 0x667   : > { %v2279_v62 = vadd.f32 %v2278_v60, %v2262_v36 }
 0x668   : > { %v2302_v63 = vpop.f32.mrf.mxu3 }
 0x669   : > { %v2445_v3 = vsel %vm1387_vm8, %v2444_v26, %v2302_v63 }
 0x66a   : > { %v2322_v0 = vpop.f32.mrf.mxu0  ;;  %v2447_v5 = vsel %vm1391_vm9, %v2446_v49, %v2445_v3 }
 0x66c   : > { %v2340_v47 = vpop.f32.mrf.mxu1 }
 0x66e   : > { %v2280_v6 = vpop.f32.mrf.mxu2 }
 0x670   : > { %v2304_v1 = vpop.f32.mrf.mxu3 }
 0x672   : > { %v2392_v12 = vpop.f32.mrf.mxu0 }
 0x673   : > { %v2452_v14 = vrot.slane %v2392_v12, 3 }
 0x674   : > { %v2410_v48 = vpop.f32.mrf.mxu1 }
 0x675   : > { %v2454_v61 = vrot.slane %v2410_v48, 2 }
 0x676   : > { %v2356_v11 = vpop.f32.mrf.mxu2 }
 0x677   : > { %v2448_v4 = vrot.slane %v2356_v11, 5 }
 0x678   : > { %v2374_v15 = vpop.f32.mrf.mxu3 }
 0x679   : > { %v2450_v7 = vrot.slane %v2374_v15, 4  ;;  %v2449_v9 = vsel %vm1395_vm10, %v2448_v4, %v2447_v5 }
 0x67a   : > { %v2394_v2 = vpop.f32.mrf.mxu0 }
 0x67b   : > { %v2451_v13 = vsel %vm1591_vm11, %v2450_v7, %v2449_v9 }
 0x67c   : > { %v2412_v32 = vpop.f32.mrf.mxu1  ;;  %v2453_v16 = vsel %vm1594_vm12, %v2452_v14, %v2451_v13 }
 0x67d   : > { %v2455_v19 = vsel %vm1597_vm13, %v2454_v61, %v2453_v16 }
 0x67e   : > { %v2358_v8 = vpop.f32.mrf.mxu2 }
 0x680   : > { %v2376_v10 = vpop.f32.mrf.mxu3 }
 0x686   : > { %v2428_v17 = vpop.f32.mrf.mxu2 }
 0x687   : > { %v2456_v18 = vrot.slane %v2428_v17, 1 }
 0x688   : > { %v2474_v20 = vpop.f32.mrf.mxu3 }
 0x689   : > { %v2457_v21 = vsel %vm1600_vm14, %v2456_v18, %v2455_v19 }
 0x68a   : > { %v2475_v22 = vadd.f32 %v2474_v20, %v2457_v21 }
 0x68c   : > { %v2478_v23 = vmul.f32 0.35355338, %v2475_v22 }
 0x68e   : > { %v2430_v27 = vpop.f32.mrf.mxu2  ;;  %v2479_v30 = vadd.f32 %v5270_v24, %v2478_v23 }
 0x690   : > { %v2476_v31 = vpop.f32.mrf.mxu3  ;;  %v2480_v33 = vsel %vm1409_vm6, %v2479_v30, -inf }
 0x691   : > { %2481 = vmax.xlane.f32.xlu0 %v2480_v33 }
 0x6a5   : > { %2780 = vrot.lane.b32.xlu0 %v5209_v25, %s4589_s11  ;;  %v2660_v25 = vpop.permute.xlu2 %2659 }
 0x6a6   : > { %v2687_v26 = vsel %vm1666_vm15, %v2660_v25, 0 }
 0x6ad   : > { %2834 = vrot.lane.b32.xlu0 %v5223_v29, %s4589_s11  ;;  %v5463_v24 = vpop.permute.xlu2 %2708 }
 0x6b5   : > { %v2727_v63 = vpop.permute.xlu2 %2726 }
 0x6bd   : > { %v2745_v49 = vpop.permute.xlu2 %2744 }
 0x6c5   : > { %v2763_v61 = vpop.permute.xlu2 %2762 }
 0x6cd   : > { %v2799_v22 = vpop.permute.xlu2 %2798 }
 0x6d5   : > { %v2855_v27 = vpop.permute.xlu2 %2854 }
 0x704   : > { %v2482_v35 = vpop.xlane.xlu0 %2481 }
 0x705   : > { %v2483_v36 = vsub.f32 %v2479_v30, %v2482_v35 }
 0x707   : > { %v2484_v53 = vmul.f32 1.442695, %v2483_v36 }
 0x709   : > { %4145 = vpow2.f32 %v2484_v53 }
 0x70f   : > { %v4146_v54 = vpop.eup %4145 }
 0x710   : > { %v2486_v55 = vsel %vm1409_vm6, %v4146_v54, 0.0 }
 0x711   : > { %2487 = vadd.xlane.f32.xlu1 %v2486_v55 }
 0x72a   : > { %2816 = vrot.lane.b32.xlu1 %v5217_v28, %s4589_s11 }
 0x732   : > { %3079 = vrot.lane.b32.xlu1 %v5243_v34, %s4589_s11 }
 0x73a   : > { %2283 = vrot.lane.b32.xlu1 %v2279_v62, %s4590_s7 }
 0x784   : > { %v2488_v29 = vpop.xlane.xlu1 %2487 }
 0x785   : > { %4147 = vrcp.f32 %v2488_v29 }
 0x78b   : > { %v4148_v45 = vpop.eup %4147 }
 0x78c   : > { %v2490_v60 = vmul.f32 %v4148_v45, %v4146_v54 }
 0x78e   : > { %v2491_v0 = vpack.c.bf16 %v2490_v60, %v2490_v60 }
 0x790   : > { %v2493_v47 = vrot.slane %v2491_v0, 3 }
 0x792   : > { %v2496_v6 = vsel %vm1382_vm7, %v2491_v0, %v2493_v47  ;;  %v2498_v1 = vsel %vm1387_vm8, %v2491_v0, %v2493_v47  ;;  %v2501_v32 = vsel %vm1391_vm9, %v2491_v0, %v2493_v47  ;;  %v2504_v7 = vsel %vm1395_vm10, %v2491_v0, %v2493_v47 }
 0x793   : > { %v3855_v28 = vpack.i.b16 %v2496_v6, %v2496_v6  ;;  %v2508_v12 = vunpack.i.h.s16 %v2496_v6  ;;  %v2500_v48 = vrot.slane %v2498_v1, 1  ;;  %v2503_v8 = vrot.slane %v2501_v32, 2 }
 0x794   : > { %v2506_v10 = vrot.slane %v2504_v7, 3 }
 0x795   : > { %v2516_v34 = vperm.slane %v3855_v28, 0  ;;  %v2533_v11 = vpack.i.b16 %v2508_v12, %v2508_v12  ;;  %v3858_v62 = vpack.i.b16 %v2500_v48, %v2500_v48  ;;  %v2510_v15 = vunpack.i.h.s16 %v2500_v48 }
 0x796   : > { %v2512_v13 = vunpack.i.h.s16 %v2503_v8  ;;  %v3861_v14 = vpack.i.b16 %v2503_v8, %v2503_v8  ;;  %v2514_v16 = vunpack.i.h.s16 %v2506_v10  ;;  %v3864_v18 = vpack.i.b16 %v2506_v10, %v2506_v10 }
 0x797   : > { %3856 = vmatmul.msk.bf16.vlgmr.msra.gmra.mxu0 %vm1409_vm6, %v2516_v34  ;;  %v2534_v2 = vperm.slane %v2533_v11, 0  ;;  %v2552_v3 = vperm.slane %v3858_v62, 0  ;;  %v2569_v4 = vpack.i.b16 %v2510_v15, %v2510_v15 }
 0x798   : > { %2696 = vmatpush.bf16.msra.mxu0 %v2687_v26  ;;  %v2605_v17 = vpack.i.b16 %v2512_v13, %v2512_v13  ;;  %v2588_v20 = vperm.slane %v3861_v14, 0  ;;  %v2641_v21 = vpack.i.b16 %v2514_v16, %v2514_v16 }
 0x799   : > { %3857 = vmatmul.msk.bf16.vlgmr.msra.gmra.mxu1 %vm1409_vm6, %v2534_v2  ;;  %3859 = vmatmul.msk.bf16.vlgmr.msra.gmra.mxu2 %vm1409_vm6, %v2552_v3  ;;  %v2570_v5 = vperm.slane %v2569_v4, 0 }
 0x79a   : > { %2720 = vmatpush.bf16.xpose.msra.mxu1 %v5099_v39  ;;  %2738 = vmatpush.bf16.xpose.msra.mxu2 %v5103_v40  ;;  %v2606_v39 = vperm.slane %v2605_v17, 0  ;;  %v2624_v40 = vperm.slane %v3864_v18, 0 }
 0x79b   : > { %3860 = vmatmul.msk.bf16.vlgmr.msra.gmra.mxu3 %vm1409_vm6, %v2570_v5 }
 0x79c   : > { %v2817_v9 = vpop.permute.xlu1 %2816  ;;  %2756 = vmatpush.bf16.xpose.msra.mxu3 %v5114_v42  ;;  %v2642_v42 = vperm.slane %v2641_v21, 0 }
 0x7a4   : > { %v5477_v19 = vpop.permute.xlu1 %3079 }
 0x7a7   : > { %3862 = vmatmul.msk.bf16.vlgmr.msrb.gmra.mxu0 %vm1409_vm6, %v2588_v20 }
 0x7a8   : > { %2774 = vmatpush.bf16.xpose.msrb.mxu0 %v5124_v44  ;;  %v2883_v44 = vsel %vm1409_vm6, %v2855_v27, 0 }
 0x7a9   : > { %3863 = vmatmul.msk.bf16.vlgmr.msrb.gmra.mxu1 %vm1409_vm6, %v2606_v39  ;;  %3865 = vmatmul.msk.bf16.vlgmr.msrb.gmra.mxu2 %vm1409_vm6, %v2624_v40 }
 0x7aa   : > { %2792 = vmatpush.bf16.xpose.msrb.mxu1 %v5134_v46  ;;  %2810 = vmatpush.bf16.xpose.msrb.mxu2 %v5154_v50  ;;  %v2781_v46 = vpop.permute.xlu0 %2780 }
 0x7ab   : > { %3866 = vmatmul.msk.bf16.vlgmr.msrb.gmra.mxu3 %vm1409_vm6, %v2642_v42 }
 0x7ac   : > { %v2284_v23 = vpop.permute.xlu1 %2283  ;;  %2828 = vmatpush.bf16.xpose.msrb.mxu3 %v5158_v51  ;;  %v2853_v51 = vpop.permute.xlu2 %2852 }
 0x7ad   : > { %2287 = vst.msk [vmem:[#allocation3] sm:$0xff] %vm2286_vm0, %v2284_v23 }
 0x7b2   : > { %v2835_v50 = vpop.permute.xlu0 %2834 }
 0x7b7   : > { %3867 = vmatmul.msk.bf16.vlgmr.msra.gmra.mxu0 %vm1409_vm6, %v2491_v0 }
 0x7b8   : > { %2846 = vmatpush.bf16.xpose.msra.mxu0 %v5162_v52 }
 0x7b9   : > { %3868 = vmatmul.msk.bf16.vlgmr.msra.gmra.mxu1 %vm1409_vm6, %v5463_v24  ;;  %3869 = vmatmul.msk.bf16.vlgmr.msra.gmra.mxu2 %vm1409_vm6, %v2727_v63 }
 0x7ba   : > { %2892 = vmatpush.bf16.xpose.msra.mxu1 %v2883_v44  ;;  %2947 = vmatpush.bf16.msra.mxu2 %v5279_v56 }
 0x7bb   : > { %3870 = vmatmul.msk.bf16.vlgmr.msra.gmra.mxu3 %vm1409_vm6, %v2745_v49 }
 0x7bc   : > { %2965 = vmatpush.bf16.msra.mxu3 %v5283_v57 }
 0x7c7   : > { %3871 = vmatmul.msk.bf16.vlgmr.msrb.gmra.mxu0 %vm1409_vm6, %v2763_v61 }
 0x7c8   : > { %2983 = vmatpush.bf16.msrb.mxu0 %v5287_v58 }
 0x7c9   : > { %3872 = vmatmul.msk.bf16.vlgmr.msrb.gmra.mxu1 %vm1409_vm6, %v2781_v46  ;;  %3873 = vmatmul.msk.bf16.vlgmr.msrb.gmra.mxu2 %vm1409_vm6, %v2799_v22 }
 0x7ca   : > { %3019 = vmatpush.bf16.msrb.mxu2 %v5297_v37  ;;  %3001 = vmatpush.bf16.msrb.mxu1 %v5291_v59 }
 0x7cb   : > { %3874 = vmatmul.msk.bf16.vlgmr.msrb.gmra.mxu3 %vm1409_vm6, %v2817_v9 }
 0x7cc   : > { %3037 = vmatpush.bf16.msrb.mxu3 %v5304_v38 }
 0x7d7   : > { %3875 = vmatmul.msk.bf16.vlgmr.msra.gmra.mxu0 %vm1409_vm6, %v2835_v50 }
 0x7d8   : > { %3055 = vmatpush.bf16.msra.mxu0 %v5309_v41 }
 0x7d9   : > { %3876 = vmatmul.msk.bf16.vlgmr.msra.gmra.mxu1 %vm1409_vm6, %v2853_v51 }
 0x7da   : > { %3073 = vmatpush.bf16.msra.mxu1 %v5313_v43 }
 0x814   : > { %v2529_v52 = vpop.f32.mrf.mxu0 }
 0x816   : > { %v2547_v56 = vpop.f32.mrf.mxu1 }
 0x817   : > { %v2669_v30 = vrot.slane %v2547_v56, 7 }
 0x819   : > { %v2670_v53 = vsel %vm1387_vm8, %v2669_v30, %v2529_v52 }
 0x81c   : > { %v2531_v57 = vpop.f32.mrf.mxu0  ;;  %v2565_v58 = vpop.f32.mrf.mxu2 }
 0x81d   : > { %v2671_v38 = vrot.slane %v2565_v58, 6  ;;  %v4161_v58 = vld [vmem:[%s5818_s2] ss:$0 sm:$0xff] }
 0x81e   : > { %v2549_v37 = vpop.f32.mrf.mxu1  ;;  %v2583_v59 = vpop.f32.mrf.mxu3 }
 0x81f   : > { %v2673_v54 = vrot.slane %v2583_v59, 5  ;;  %v2672_v41 = vsel %vm1391_vm9, %v2671_v38, %v2670_v53 }
 0x821   : > { %v2674_v43 = vsel %vm1395_vm10, %v2673_v54, %v2672_v41 }
 0x824   : > { %v2567_v31 = vpop.f32.mrf.mxu2  ;;  %v2601_v33 = vpop.f32.mrf.mxu0 }
 0x825   : > { %v2675_v55 = vrot.slane %v2601_v33, 4 }
 0x826   : > { %v2585_v35 = vpop.f32.mrf.mxu3  ;;  %v2619_v36 = vpop.f32.mrf.mxu1 }
 0x827   : > { %v2677_v25 = vrot.slane %v2619_v36, 3  ;;  %v2676_v45 = vsel %vm1591_vm11, %v2675_v55, %v2674_v43 }
 0x829   : > { %v2678_v47 = vsel %vm1594_vm12, %v2677_v25, %v2676_v45 }
 0x82c   : > { %v2603_v24 = vpop.f32.mrf.mxu0  ;;  %v2637_v29 = vpop.f32.mrf.mxu2 }
 0x82d   : > { %v2679_v60 = vrot.slane %v2637_v29, 2 }
 0x82e   : > { %v2621_v63 = vpop.f32.mrf.mxu1  ;;  %v2655_v0 = vpop.f32.mrf.mxu3 }
 0x82f   : > { %v2681_v6 = vrot.slane %v2655_v0, 1  ;;  %v2680_v1 = vsel %vm1597_vm13, %v2679_v60, %v2678_v47 }
 0x831   : > { %v2682_v12 = vsel %vm1600_vm14, %v2681_v6, %v2680_v1 }
 0x834   : > { %v2639_v28 = vpop.f32.mrf.mxu2  ;;  %v2698_v48 = vpop.f32.mrf.mxu0 }
 0x835   : > { %v2699_v34 = vadd.f32 %v2698_v48, %v2682_v12  ;;  %v3107_v28 = vsel %vm1666_vm15, %v5477_v19, 0 }
 0x836   : > { %v2657_v11 = vpop.f32.mrf.mxu3  ;;  %v2722_v62 = vpop.f32.mrf.mxu1 }
 0x837   : > { %2703 = vrot.lane.b32.xlu1 %v2699_v34, %s4591_s4 }
 0x83c   : > { %v2700_v15 = vpop.f32.mrf.mxu0  ;;  %v2740_v26 = vpop.f32.mrf.mxu2 }
 0x83d   : > { %v2864_v7 = vrot.slane %v2740_v26, 7 }
 0x83e   : > { %v2724_v2 = vpop.f32.mrf.mxu1  ;;  %v2758_v3 = vpop.f32.mrf.mxu3 }
 0x83f   : > { %v2866_v8 = vrot.slane %v2758_v3, 6  ;;  %v2865_v9 = vsel %vm1387_vm8, %v2864_v7, %v2722_v62 }
 0x841   : > { %v2867_v16 = vsel %vm1391_vm9, %v2866_v8, %v2865_v9 }
 0x844   : > { %v2742_v4 = vpop.f32.mrf.mxu2  ;;  %v2776_v49 = vpop.f32.mrf.mxu0 }
 0x845   : > { %v2868_v10 = vrot.slane %v2776_v49, 5 }
 0x846   : > { %v2760_v32 = vpop.f32.mrf.mxu3  ;;  %v2794_v5 = vpop.f32.mrf.mxu1 }
 0x847   : > { %v2870_v61 = vrot.slane %v2794_v5, 4  ;;  %v2869_v20 = vsel %vm1395_vm10, %v2868_v10, %v2867_v16 }
 0x849   : > { %v2871_v39 = vsel %vm1591_vm11, %v2870_v61, %v2869_v20 }
 0x84c   : > { %v2778_v13 = vpop.f32.mrf.mxu0  ;;  %v2812_v14 = vpop.f32.mrf.mxu2 }
 0x84d   : > { %v2872_v21 = vrot.slane %v2812_v14, 3 }
 0x84e   : > { %v2796_v17 = vpop.f32.mrf.mxu1  ;;  %v2830_v18 = vpop.f32.mrf.mxu3 }
 0x84f   : > { %v2874_v40 = vrot.slane %v2830_v18, 2  ;;  %v2873_v42 = vsel %vm1594_vm12, %v2872_v21, %v2871_v39  ;;  %v3943_v21 = vld [vmem:[%s5819_s13 + $0x8] sm:$0xff]  ;;  %s5830_s13 = sld [smem:[#allocation32_spill]] }
 0x851   : > { %v2875_v46 = vsel %vm1597_vm13, %v2874_v40, %v2873_v42 }
 0x854   : > { %v2814_v22 = vpop.f32.mrf.mxu2  ;;  %v2848_v23 = vpop.f32.mrf.mxu0 }
 0x855   : > { %v2876_v27 = vrot.slane %v2848_v23, 1  ;;  %p3925_p4 = scmp.ne.s32.totalorder %s5830_s13, 1 }
 0x856   : > { %v2832_v44 = vpop.f32.mrf.mxu3  ;;  %v2894_v50 = vpop.f32.mrf.mxu1  ;;  %s5831_s30 = sld [smem:[#allocation66_spill]] (!%p3925_p4) }
 0x857   : > { %v2877_v51 = vsel %vm1600_vm14, %v2876_v27, %v2875_v46  ;;  %s5832_s3 = sld [smem:[#allocation68_spill]] (!%p3925_p4) }
 0x858   : > { %v2895_v52 = vadd.f32 %v2894_v50, %v2877_v51 }
 0x85a   : > { %v2898_v56 = vmul.f32 0.35355338, %v2895_v52 }
 0x85c   : > { %v2850_v57 = vpop.f32.mrf.mxu0  ;;  %v2899_v37 = vadd.f32 %v4161_v58, %v2898_v56 }
 0x85e   : > { %v2896_v59 = vpop.f32.mrf.mxu1  ;;  %v2900_v30 = vsel %vm1409_vm6, %v2899_v37, -inf }
 0x85f   : > { %2901 = vmax.xlane.f32.xlu0 %v2900_v30 }
 0x8a9   : > { %v2704_v31 = vpop.permute.xlu1 %2703 }
 0x8aa   : > { %2707 = vst.msk [vmem:[#allocation3] sm:$0xff] %vm2706_vm1, %v2704_v31 }
 0x8d2   : > { %v2902_v33 = vpop.xlane.xlu0 %2901 }
 0x8d3   : > { %v2903_v38 = vsub.f32 %v2899_v37, %v2902_v33 }
 0x8d5   : > { %v2904_v35 = vmul.f32 1.442695, %v2903_v38 }
 0x8d7   : > { %4149 = vpow2.f32 %v2904_v35 }
 0x8dd   : > { %v4150_v36 = vpop.eup %4149 }
 0x8de   : > { %v2906_v53 = vsel %vm1409_vm6, %v4150_v36, 0.0 }
 0x8df   : > { %2907 = vadd.xlane.f32.xlu2 %v2906_v53 }
 0x952   : > { %v2908_v54 = vpop.xlane.xlu2 %2907 }
 0x953   : > { %4151 = vrcp.f32 %v2908_v54 }
 0x959   : > { %v4152_v41 = vpop.eup %4151 }
 0x95a   : > { %v2910_v55 = vmul.f32 %v4152_v41, %v4150_v36 }
 0x95c   : > { %v2911_v43 = vpack.c.bf16 %v2910_v55, %v2910_v55 }
 0x95e   : > { %v2913_v25 = vrot.slane %v2911_v43, 3 }
 0x960   : > { %v2916_v24 = vsel %vm1382_vm7, %v2911_v43, %v2913_v25  ;;  %v2918_v29 = vsel %vm1387_vm8, %v2911_v43, %v2913_v25  ;;  %v2921_v11 = vsel %vm1391_vm9, %v2911_v43, %v2913_v25  ;;  %v2924_v15 = vsel %vm1395_vm10, %v2911_v43, %v2913_v25 }
 0x961   : > { %v3877_v45 = vpack.i.b16 %v2916_v24, %v2916_v24  ;;  %v2928_v60 = vunpack.i.h.s16 %v2916_v24  ;;  %v2920_v63 = vrot.slane %v2918_v29, 1  ;;  %v2923_v26 = vrot.slane %v2921_v11, 2 }
 0x962   : > { %v2926_v2 = vrot.slane %v2924_v15, 3 }
 0x963   : > { %v2936_v0 = vperm.slane %v3877_v45, 0  ;;  %v2953_v47 = vpack.i.b16 %v2928_v60, %v2928_v60  ;;  %v3880_v6 = vpack.i.b16 %v2920_v63, %v2920_v63  ;;  %v2930_v1 = vunpack.i.h.s16 %v2920_v63  ;;  %v4130_v45 = vld [vmem:[%s1195_s14] ss:$0 sm:$0xff]  ;;  %s5822_s14 = scalar_lea.vmem [#allocation13], %s4991_s26 }
 0x964   : > { %v2932_v19 = vunpack.i.h.s16 %v2923_v26  ;;  %v3883_v3 = vpack.i.b16 %v2923_v26, %v2923_v26  ;;  %v2934_v4 = vunpack.i.h.s16 %v2926_v2  ;;  %v3886_v32 = vpack.i.b16 %v2926_v2, %v2926_v2  ;;  %s5823_s5 = smov %s5822_s14 }
 0x965   : > { %3878 = vmatmul.msk.bf16.vlgmr.msra.gmra.mxu2 %vm1409_vm6, %v2936_v0  ;;  %v2954_v12 = vperm.slane %v2953_v47, 0  ;;  %v2972_v48 = vperm.slane %v3880_v6, 0  ;;  %v2989_v34 = vpack.i.b16 %v2930_v1, %v2930_v1  ;;  %v4162_v0 = vld [vmem:[#allocation2] sm:$0xff] }
 0x966   : > { %3116 = vmatpush.bf16.msra.mxu2 %v3107_v28  ;;  %v3025_v49 = vpack.i.b16 %v2932_v19, %v2932_v19  ;;  %v3008_v5 = vperm.slane %v3883_v3, 0  ;;  %v3061_v7 = vpack.i.b16 %v2934_v4, %v2934_v4  ;;  %v3044_v9 = vperm.slane %v3886_v32, 0  ;;  %v3944_v32 = vld [vmem:[%s5823_s5] sm:$0xff] }
 0x967   : > { %3879 = vmatmul.msk.bf16.vlgmr.msra.gmra.mxu3 %vm1409_vm6, %v2954_v12  ;;  %3881 = vmatmul.msk.bf16.vlgmr.msrb.gmra.mxu0 %vm1409_vm6, %v2972_v48  ;;  %v2990_v62 = vperm.slane %v2989_v34, 0  ;;  %v4593_v28 = vmov 32.0  }
 0x968   : > { %v3026_v8 = vperm.slane %v3025_v49, 0  ;;  %v3062_v10 = vperm.slane %v3061_v7, 0  ;;  %3159 = vmatpush.bf16.msra.mxu3 %v3943_v21  ;;  %4153 = vrcp.f32 %v4593_v28  ;;  %v3945_v49 = vld [vmem:[%s5822_s14 + $0x8] sm:$0xff] }
 0x969   : > { %3882 = vmatmul.msk.bf16.vlgmr.msrb.gmra.mxu1 %vm1409_vm6, %v2990_v62  ;;  %3236 = vmatpush.bf16.msrb.mxu0 %v3945_v49 }
 0x96d   : > { %3237 = vmatpush.bf16.msrb.mxu0 %v3944_v32 }
 0x96e   : > { %v4154_v12 = vpop.eup %4153 }
 0x96f   : > { %v3173_v48 = vmul.f32 32.0, %v4154_v12  ;;  %vm3177_vm3 = vweird.f32 %v4154_v12 }
 0x971   : > { %v3174_v34 = vsub.f32 1.0, %v3173_v48 }
 0x973   : > { %v3175_v11 = vmul.f32 %v4154_v12, %v3174_v34 }
 0x975   : > { %3884 = vmatmul.msk.bf16.vlgmr.msrb.gmra.mxu2 %vm1409_vm6, %v3008_v5  ;;  %v3176_v62 = vadd.f32 %v4154_v12, %v3175_v11  ;;  %v4135_v11 = vld [vmem:[%s5004_s15] ss:$0 sm:$0xff] }
 0x977   : > { %3885 = vmatmul.msk.bf16.vlgmr.msrb.gmra.mxu3 %vm1409_vm6, %v3026_v8  ;;  %3887 = vmatmul.msk.bf16.vlgmr.msra.gmra.mxu0 %vm1409_vm6, %v3044_v9  ;;  %v5559_v15 = vsel %vm3177_vm3, %v4154_v12, %v3176_v62 }
 0x979   : > { %3888 = vmatmul.msk.bf16.vlgmr.msra.gmra.mxu1 %vm1409_vm6, %v3062_v10 }
 0x985   : > { %3889 = vmatmul.msk.bf16.vlgmr.msra.gmra.mxu2 %vm1409_vm6, %v2911_v43  ;;  %v3942_v43 = vld [vmem:[%s5820_s23] sm:$0xff] }
 0x986   : > { %3160 = vmatpush.bf16.msra.mxu3 %v3942_v43 }
 0x9e4   : > { %v2985_v13 = vpop.f32.mrf.mxu0 }
 0x9e5   : > { %v3091_v44 = vrot.slane %v2985_v13, 6 }
 0x9e6   : > { %v3003_v14 = vpop.f32.mrf.mxu1 }
 0x9e7   : > { %v3093_v52 = vrot.slane %v3003_v14, 5 }
 0x9e8   : > { %v2949_v16 = vpop.f32.mrf.mxu2 }
 0x9ea   : > { %v2967_v61 = vpop.f32.mrf.mxu3 }
 0x9eb   : > { %v3089_v40 = vrot.slane %v2967_v61, 7 }
 0x9ec   : > { %v2987_v17 = vpop.f32.mrf.mxu0 }
 0x9ed   : > { %v3090_v23 = vsel %vm1387_vm8, %v3089_v40, %v2949_v16  ;;  %v4131_v17 = vld [vmem:[%s5825_s28] ss:$0 sm:$0xff]  ;;  %vm3289_vm8 = vcmask 523264  }
 0x9ee   : > { %v3005_v18 = vpop.f32.mrf.mxu1  ;;  %v3092_v50 = vsel %vm1391_vm9, %v3091_v44, %v3090_v23  ;;  %v3948_v23 = vld [vmem:[%s5061_s9 + $0x10] sm:$0xff]  ;;  %v3946_v44 = vld [vmem:[%s5061_s9] sm:$0xff] }
 0x9ef   : > { %v3094_v57 = vsel %vm1395_vm10, %v3093_v52, %v3092_v50 }
 0x9f0   : > { %v2951_v20 = vpop.f32.mrf.mxu2 }
 0x9f1   : > { %v4132_v20 = vld [vmem:[%s1201_s24] ss:$0 sm:$0xff] }
 0x9f2   : > { %v2969_v39 = vpop.f32.mrf.mxu3 }
 0x9f4   : > { %v3057_v42 = vpop.f32.mrf.mxu0 }
 0x9f5   : > { %v3099_v38 = vrot.slane %v3057_v42, 2 }
 0x9f6   : > { %v3075_v22 = vpop.f32.mrf.mxu1 }
 0x9f7   : > { %v3101_v36 = vrot.slane %v3075_v22, 1  ;;  %v3949_v22 = vld [vmem:[%s5061_s9 + $0x18] sm:$0xff] }
 0x9f8   : > { %v3021_v27 = vpop.f32.mrf.mxu2  ;;  %3297 = vmatpush.bf16.msrb.mxu1 %v3949_v22 }
 0x9f9   : > { %v3095_v51 = vrot.slane %v3021_v27, 4  ;;  %v3947_v27 = vld [vmem:[%s5061_s9 + $0x8] sm:$0xff] }
 0x9fa   : > { %v3039_v46 = vpop.f32.mrf.mxu3 }
 0x9fb   : > { %v3097_v58 = vrot.slane %v3039_v46, 3  ;;  %v3096_v59 = vsel %vm1591_vm11, %v3095_v51, %v3094_v57  ;;  %v4133_v46 = vld [vmem:[%s1204_s22] ss:$0 sm:$0xff] }
 0x9fc   : > { %v3059_v56 = vpop.f32.mrf.mxu0  ;;  %3298 = vmatpush.bf16.msrb.mxu1 %v3948_v23 }
 0x9fd   : > { %v3098_v31 = vsel %vm1594_vm12, %v3097_v58, %v3096_v59 }
 0x9fe   : > { %v3077_v37 = vpop.f32.mrf.mxu1  ;;  %v3100_v35 = vsel %vm1597_vm13, %v3099_v38, %v3098_v31 }
 0x9ff   : > { %v3102_v53 = vsel %vm1600_vm14, %v3101_v36, %v3100_v35  ;;  %v4134_v36 = vld [vmem:[%s1212_s27] ss:$0 sm:$0xff] }
 0xa00   : > { %v3023_v30 = vpop.f32.mrf.mxu2  ;;  %3299 = vmatpush.bf16.msrb.mxu1 %v3947_v27 }
 0xa02   : > { %v3041_v33 = vpop.f32.mrf.mxu3 }
 0xa04   : > { %3300 = vmatpush.bf16.msrb.mxu1 %v3946_v44 }
 0xa08   : > { %v3118_v54 = vpop.f32.mrf.mxu2 }
 0xa09   : > { %v3119_v41 = vadd.f32 %v3118_v54, %v3102_v53 }
 0xa0b   : > { %3123 = vrot.lane.b32.xlu1 %v3119_v41, %s4592_s12 }
 0xa10   : > { %v3120_v55 = vpop.f32.mrf.mxu2 }
 0xa7d   : > { %v3124_v25 = vpop.permute.xlu1 %3123 }
 0xa7e   : > { %3127 = vst.msk [vmem:[#allocation3] sm:$0xff] %vm3126_vm2, %v3124_v25 }
 0xa85   : > { %v3128_v24 = vld [vmem:[#allocation3] sm:$0xff] }
 0xa86   : > { %v3129_v29 = vpack.c.bf16 %v3128_v24, %v3128_v24 }
 0xa88   : > { %3898 = vmatmul.msk.bf16.vlgmr.msra.gmra.mxu3 %vm1294_vm5, %v3129_v29 }
 0xb0b   : > { %v3162_v60 = vpop.f32.mrf.mxu3 }
 0xb0c   : > { %v3163_v63 = vadd.f32 %v4130_v45, %v3162_v60 }
 0xb0e   : > { %v3166_v47 = vadd.f32 %v4162_v0, %v3163_v63 }
 0xb10   : > { %v3169_v6 = vsel %vm1294_vm5, %v3166_v47, 0.0 }
 0xb11   : > { %3170 = vadd.xlane.f32.xlu1 %v3169_v6 }
 0xb13   : > { %v3164_v1 = vpop.f32.mrf.mxu3 }
 0xb84   : > { %v3171_v26 = vpop.xlane.xlu1 %3170 }
 0xb85   : > { %v3179_v2 = vmul.f32 %v5559_v15, %v3171_v26  ;;  %v4136_v26 = vld [vmem:[%s1215_s6] ss:$0 sm:$0xff] }
 0xb87   : > { %v3180_v19 = vsub.f32 %v3166_v47, %v3179_v2 }
 0xb89   : > { %v3181_v3 = vmul.f32 %v3180_v19, %v3180_v19 }
 0xb8b   : > { %v3182_v4 = vsel %vm1294_vm5, %v3181_v3, 0.0 }
 0xb8c   : > { %3183 = vadd.xlane.f32.xlu0 %v3182_v4 }
 0xbff   : > { %v3184_v5 = vpop.xlane.xlu0 %3183 }
 0xc00   : > { %v3185_v7 = vmul.f32 %v3184_v5, %v5559_v15 }
 0xc02   : > { %v3186_v8 = vadd.f32 1e-12, %v3185_v7 }
 0xc04   : > { %4155 = vrsqrt.f32 %v3186_v8  ;;  %vm3193_vm6 = vweird.f32 %v3186_v8 }
 0xc0a   : > { %v4156_v9 = vpop.eup %4155 }
 0xc0b   : > { %v3188_v10 = vmul.f32 %v4156_v9, %v3186_v8  ;;  %vm3194_vm4 = vweird.f32 %v4156_v9 }
 0xc0c   : > { %vm3195_vm7 = vmor %vm3193_vm6, %vm3194_vm4 }
 0xc0d   : > { %v3189_v13 = vmul.f32 %v4156_v9, %v3188_v10 }
 0xc0f   : > { %v3190_v14 = vmul.f32 0.5, %v3189_v13 }
 0xc11   : > { %v3191_v16 = vsub.f32 1.5, %v3190_v14 }
 0xc13   : > { %v3192_v61 = vmul.f32 %v4156_v9, %v3191_v16 }
 0xc15   : > { %v3196_v18 = vsel %vm3195_vm7, %v4156_v9, %v3192_v61 }
 0xc16   : > { %v3197_v21 = vmul.f32 %v3196_v18, %v3180_v19 }
 0xc18   : > { %v3201_v39 = vmul.f32 %v4131_v17, %v3197_v21 }
 0xc1a   : > { %v3205_v40 = vadd.f32 %v4132_v20, %v3201_v39 }
 0xc1c   : > { %v3206_v42 = vpack.c.bf16 %v3205_v40, %v3205_v40 }
 0xc1e   : > { %3907 = vmatmul.msk.bf16.vlgmr.msrb.gmra.mxu0 %vm1294_vm5, %v3206_v42 }
 0xc9b   : > { %v3239_v50 = vpop.f32.mrf.mxu0 }
 0xc9c   : > { %v3240_v51 = vadd.f32 %v4133_v46, %v3239_v50 }
 0xc9e   : > { %v3244_v52 = vmul.f32 0.044715, %v3240_v51  ;;  %v3243_v31 = vmul.f32 0.5, %v3240_v51 }
 0xca0   : > { %v3245_v56 = vmul.f32 %v3244_v52, %v3240_v51 }
 0xca2   : > { %v3246_v57 = vmul.f32 %v3245_v56, %v3240_v51 }
 0xca3   : > { %v3241_v58 = vpop.f32.mrf.mxu0 }
 0xca4   : > { %v3247_v37 = vadd.f32 %v3246_v57, %v3240_v51 }
 0xca6   : > { %v3248_v59 = vmul.f32 0.7978846, %v3247_v37 }
 0xca8   : > { %4157 = vtanh.f32 %v3248_v59 }
 0xcae   : > { %v4158_v30 = vpop.eup %4157 }
 0xcaf   : > { %v3250_v33 = vadd.f32 1.0, %v4158_v30 }
 0xcb1   : > { %v3251_v38 = vmul.f32 %v3250_v33, %v3243_v31 }
 0xcb3   : > { %v3252_v35 = vpack.c.bf16 %v3251_v38, %v3251_v38 }
 0xcb5   : > { %3924 = vmatmul.msk.bf16.vlgmr.msrb.gmra.mxu1 %vm3289_vm8, %v3252_v35 }
 0xd32   : > { %v3302_v53 = vpop.f32.mrf.mxu1 }
 0xd33   : > { %v3303_v54 = vadd.f32 %v4134_v36, %v3302_v53 }
 0xd35   : > { %v3306_v41 = vadd.f32 %v3303_v54, %v3205_v40 }
 0xd37   : > { %v3309_v55 = vsel %vm1294_vm5, %v3306_v41, 0.0 }
 0xd38   : > { %3310 = vadd.xlane.f32.xlu2 %v3309_v55 }
 0xd3a   : > { %v3304_v43 = vpop.f32.mrf.mxu1 }
 0xdab   : > { %v3311_v25 = vpop.xlane.xlu2 %3310 }
 0xdac   : > { %v3312_v24 = vmul.f32 %v3311_v25, %v5559_v15 }
 0xdae   : > { %v3313_v29 = vsub.f32 %v3306_v41, %v3312_v24 }
 0xdb0   : > { %v3314_v45 = vmul.f32 %v3313_v29, %v3313_v29 }
 0xdb2   : > { %v3315_v60 = vsel %vm1294_vm5, %v3314_v45, 0.0 }
 0xdb3   : > { %3316 = vadd.xlane.f32.xlu0 %v3315_v60 }
 0xe26   : > { %v3317_v63 = vpop.xlane.xlu0 %3316 }
 0xe27   : > { %v3318_v0 = vmul.f32 %v3317_v63, %v5559_v15 }
 0xe29   : > { %v3319_v47 = vadd.f32 1e-12, %v3318_v0 }
 0xe2b   : > { %4159 = vrsqrt.f32 %v3319_v47  ;;  %vm3326_vm10 = vweird.f32 %v3319_v47 }
 0xe31   : > { %v4160_v6 = vpop.eup %4159 }
 0xe32   : > { %v3321_v1 = vmul.f32 %v4160_v6, %v3319_v47  ;;  %vm3327_vm9 = vweird.f32 %v4160_v6 }
 0xe33   : > { %vm3328_vm11 = vmor %vm3326_vm10, %vm3327_vm9 }
 0xe34   : > { %v3322_v28 = vmul.f32 %v4160_v6, %v3321_v1 }
 0xe36   : > { %v3323_v12 = vmul.f32 0.5, %v3322_v28 }
 0xe38   : > { %v3324_v48 = vsub.f32 1.5, %v3323_v12 }
 0xe3a   : > { %v3325_v34 = vmul.f32 %v4160_v6, %v3324_v48 }
 0xe3c   : > { %v3329_v62 = vsel %vm3328_vm11, %v4160_v6, %v3325_v34 }
 0xe3d   : > { %v3330_v2 = vmul.f32 %v3329_v62, %v3313_v29 }
 0xe3f   : > { %v3334_v15 = vmul.f32 %v4135_v11, %v3330_v2  ;;  %3343 = sbr.rel (%p3925_p4) target bundleno = 3924 (0xf54), region = 164 }
 0xe41   : > { %v3338_v19 = vadd.f32 %v4136_v26, %v3334_v15 }
 0xe43   : > { %3339 = vst.msk [vmem:[#allocation2] sm:$0xff] %vm1294_vm5, %v3338_v19 }
 0xe44   : > { %v3347_v3 = vld [vmem:[#allocation16 + $0x18] sm:$0xff]  ;;  %v3346_v4 = vld [vmem:[#allocation16 + $0x10] sm:$0xff]  ;;  %v3345_v49 = vld [vmem:[#allocation16 + $0x8] sm:$0xff] }
 0xe45   : > { %3364 = vmatpush.msra.mxu0 %v3347_v3  ;;  %v3344_v32 = vld [vmem:[#allocation16] sm:$0xff]  ;;  %v3376_v5 = vld [vmem:[#allocation18 + $0x18] sm:$0xff]  ;;  %v3375_v7 = vld [vmem:[#allocation18 + $0x10] sm:$0xff] }
 0xe46   : > { %3393 = vmatpush.msra.mxu1 %v3376_v5  ;;  %v3374_v8 = vld [vmem:[#allocation18 + $0x8] sm:$0xff]  ;;  %v3373_v9 = vld [vmem:[#allocation18] sm:$0xff]  ;;  %v3348_v10 = vld [vmem:[%s5831_s30] sm:$0x1] }
 0xe47   : > { %3365 = vmatpush.msra.mxu0 %v3346_v4  ;;  %v3377_v61 = vld [vmem:[%s5832_s3] sm:$0x1] }
 0xe48   : > { %3394 = vmatpush.msra.mxu1 %v3375_v7 }
 0xe49   : > { %3366 = vmatpush.msra.mxu0 %v3345_v49 }
 0xe4a   : > { %3395 = vmatpush.msra.mxu1 %v3374_v8 }
 0xe4b   : > { %3367 = vmatpush.msra.mxu0 %v3344_v32 }
 0xe4c   : > { %3926 = vmatmul.msk.f32.vlgmr.msra.gmra.mxu0 %vm1294_vm5, %v3338_v19  ;;  %3396 = vmatpush.msra.mxu1 %v3373_v9 }
 0xec9   : > { %v3369_v13 = vpop.f32.mrf.mxu0 }
 0xeca   : > { %v3370_v14 = vadd.f32 %v3369_v13, %v3348_v10 }
 0xecc   : > { %4163 = vtanh.f32 %v3370_v14 }
 0xed2   : > { %v4164_v16 = vpop.eup %4163 }
 0xed3   : > { %3927 = vmatmul.msk.f32.vlgmr.msra.gmra.mxu1 %vm1294_vm5, %v4164_v16 }
 0xf50   : > { %v3398_v17 = vpop.f32.mrf.mxu1 }
 0xf51   : > { %v3399_v18 = vadd.f32 %v3398_v17, %v3377_v61 }
 0xf53   : > { %3401 = vst [vmem:[%s1173_s10] sm:$0x1] %v3399_v18 }
 0xf54 PF: > { %s5833_s16 = sld [smem:[#allocation33_spill]]  ;;  %s3413_s19 = sshll.u32 %s1173_s10, 4  ;;  %s3414_s19 = int_to_ptr.vmem [resolvable:$true] %s3413_s19 }
 0xf55   : > { %s5834_s5 = sld [smem:[#allocation69_spill]]  ;;  %s3403_s28 = scalar_lea.sflag [#allocation6], %s4970_s0 }
 0xf5b   : > { %s3411_s26 = scalar_lea.hbm %s5834_s5, %s5833_s16  ;;  %s4455_s11 = scalar_lea.hbm %s5834_s5, 2 }
 0xf5c   : > { %s3415_s8 = sshll.u32 %s3411_s26, 4  ;;  %s3416_s8 = int_to_ptr.hbm [resolvable:$true] %s3415_s8 }
 0xf5d   : > { %s4449_s20 = sshra.s32 %s3416_s8, 4  ;;  %s4450_s20 = int_to_ptr.hbm [resolvable:$true] %s4449_s20 }
 0xf5e   : > { %s4451_s25 = scalar_lea.hbm %s4450_s20, 1  ;;  %p4456_p12 = scmp.lt.s32.totalorder %s4450_s20, %s5834_s5 }
 0xf5f   : > { %p4452_p0 = scmp.ne.s32.totalorder %s4450_s20, %s4451_s25  ;;  %p4457_p7 = scmp.lt.s32.totalorder %s4455_s11, %s4451_s25 }
 0xf61   : > { %p4453_p6 = pnand %p4452_p0, %p4918_p9  ;;  %p4458_p8 = por %p4457_p7, %p4456_p12 }
 0xf63   : > { %p4454_p10 = pneg %p4453_p6 }
 0xf65   : > { %p4459_p13 = pnand %p4458_p8, %p4454_p10 }
 0xf67   : > { %4462 = shalt.err (!%p4459_p13)
}
 0xf68   : > { %3974 = dma.vmem_to_hbm [thread:$0]  (%p4918_p9), %s3414_s19, 16, %s3416_s8, %s3403_s28  }
 0xf69 PF: > { %s5835_s0 = sld [smem:[#allocation36_spill]] }
 0xf6a   : > { %s5836_s10 = sld [smem:[#allocation29_spill]] }
 0xf6f   : > { %p4016_p2 = scmp.ge.s32.totalorder %s5835_s0, 2 }
 0xf70   : > { %s3427_s22 = sand.u32 1, %s5836_s10  }
 0xf71   : > { %p4006_p3 = pnand %p4016_p2, %p4925_p11  ;;  %s3428_s27 = scalar_lea.sflag [#allocation6], %s3427_s22 }
 0xf73   : > { %p4007_p5 = pneg %p4006_p3 }
 0xf75   : > { %4532 = dma.done.wait (%p4007_p5), %s3428_s27, 16  }
 0xf76   : > { %4534 = vsyncadd (%p4007_p5), %s3428_s27, 4294967280  ;;  %s51_s4 = sadd.s32 1, %s5835_s0   ;;  %s5838_s29 = sld [smem:[#allocation27_spill]] }
 0xf77   : > { %p48_p1 = scmp.ge.s32.totalorder %s51_s4, 6   ;;  %s5839_s2 = sld [smem:[#allocation28_spill]] }
 0xf78   : > { %s5840_s6 = sld [smem:[#allocation40_spill]] }
 0xf79   : > { %s5841_s30 = sld [smem:[#allocation30_spill]] }
 0xf7a   : > { %s5842_s7 = sld [smem:[#allocation31_spill]] }
 0xf7b   : > { %s5843_s3 = sld [smem:[#allocation43_spill]]  ;;  %50 = sbr.rel (!%p48_p1) target bundleno = 43 (0x2b), region = 282 }
 0xf7c   : > { %s5844_s26 = sld [smem:[#allocation34_spill]] }
 0xf7d   : > { %s5845_s1 = sld [smem:[#allocation35_spill]] }
 0xf7e   : > { %s5846_s8 = sld [smem:[#allocation39_spill]] }
 0xf7f   : > { %s5847_s27 = sld [smem:[#allocation41_spill]] }
 0xf80   :  { %3433 = vsyncpa [#allocation5], 1 }
 0xf81   :  { %3435 = vsyncpa [#allocation5 + $0x1], 1 }
 0xf82   :  { %3436 = vsyncpa [#allocation8], 1 }
 0xf83   :  { %3438 = vsyncpa [#allocation8 + $0x1], 1 }
 0xf84   :  { %3439 = vsyncpa [#allocation11], 1 }
 0xf85   :  { %3441 = vsyncpa [#allocation11 + $0x1], 1 }
 0xf86   :  { %3442 = vsyncpa [#allocation14], 1 }
 0xf87   :  { %3444 = vsyncpa [#allocation14 + $0x1], 1 }
 0xf88   :  { %3445 = vsyncpa [#allocation17], 1 }
 0xf89   :  { %3446 = vsyncpa [#allocation6], 1 }
 0xf8a   :  { %3448 = vsyncpa [#allocation6 + $0x1], 1 }

</bundles_post_ra>
